<compile_context>
chip_gen: v7x
topology: tpu7x:2x2x1
jax: 0.10.0
libtpu: 0.0.40
codegen_flags: <defaults>
</compile_context>

<pallas_src>
import jax
import jax.numpy as jnp
from jax.experimental import pallas as pl
from jax.experimental.pallas import tpu as pltpu

# ---- small synthetic BERT config ----
VOCAB = 100
HIDDEN = 32
N_HEADS = 2
HEAD_DIM = HIDDEN // N_HEADS
N_LAYERS = 2
INTERMEDIATE = 64
MAX_POS = 16
TYPE_VOCAB = 2
LN_EPS = 1e-12
LOGIT_PAD = 128   # lane-dense classifier output width (true logit lives in column 0)


# ---------------- in-kernel helpers (pure jnp, traced inside the kernel) ----------------

def _layernorm(x, g, b):
    mu = jnp.mean(x, axis=-1, keepdims=True)
    var = jnp.mean((x - mu) ** 2, axis=-1, keepdims=True)
    return (x - mu) * jax.lax.rsqrt(var + LN_EPS) * g + b


def _gelu_tanh(x):
    # TODO(synk): PyTorch/BERT default GELU is erf-based; tanh approximation (~1e-3 rel diff).
    return 0.5 * x * (1.0 + jnp.tanh(0.7978845608028654 * (x + 0.044715 * x * x * x)))


# ---------------- the single fused kernel ----------------

def _make_fused_kernel(B, S):
    H, nH, Dh = HIDDEN, N_HEADS, HEAD_DIM
    scale = 1.0 / (Dh ** 0.5)

    def kernel(x_ref, mask_ref, emb_g_ref, emb_b_ref,
               wqkv_ref, bqkv_ref, wo_ref, bo_ref, ln1_g_ref, ln1_b_ref,
               w1_ref, b1_ref, w2_ref, b2_ref, ln2_g_ref, ln2_b_ref,
               pool_w_ref, pool_b_ref, cls_w_ref, cls_b_ref,
               logits_ref):
        # ---- embedding LayerNorm (no residual) ----
        x = _layernorm(x_ref[...].astype(jnp.float32), emb_g_ref[...], emb_b_ref[...])
        mask = mask_ref[...].astype(jnp.float32)               # (B, S) additive mask

        # ---- encoder layers (N_LAYERS is small & static -> fully unrolled) ----
        for l in range(N_LAYERS):
            # fused QKV projection: one (B*S, H) x (H, 3H) matmul
            qkv = jnp.dot(x, wqkv_ref[l], preferred_element_type=jnp.float32) + bqkv_ref[l]
            q = qkv[:, 0 * H:1 * H]
            k = qkv[:, 1 * H:2 * H]
            v = qkv[:, 2 * H:3 * H]

            # per-(batch, head) attention with in-kernel head split (static slices)
            ctx_rows = []
            for b in range(B):
                mrow = mask[b:b + 1, :]                        # (1, S)
                head_outs = []
                for h in range(nH):
                    qs = q[b * S:(b + 1) * S, h * Dh:(h + 1) * Dh]   # (S, Dh)
                    ks = k[b * S:(b + 1) * S, h * Dh:(h + 1) * Dh]
                    vs = v[b * S:(b + 1) * S, h * Dh:(h + 1) * Dh]
                    s = jnp.dot(qs, ks.T, preferred_element_type=jnp.float32) * scale + mrow
                    s = s - jnp.max(s, axis=-1, keepdims=True)
                    p = jnp.exp(s)
                    p = p / jnp.sum(p, axis=-1, keepdims=True)
                    head_outs.append(jnp.dot(p, vs, preferred_element_type=jnp.float32))
                ctx_rows.append(jnp.concatenate(head_outs, axis=-1))  # (S, H)
            ctx = jnp.concatenate(ctx_rows, axis=0)                    # (B*S, H)

            # output projection + residual + LN (fused)
            attn_out = jnp.dot(ctx, wo_ref[l], preferred_element_type=jnp.float32) + bo_ref[l]
            x = _layernorm(attn_out + x, ln1_g_ref[l], ln1_b_ref[l])

            # FFN + GELU + residual + LN (fused)
            inter = jnp.dot(x, w1_ref[l], preferred_element_type=jnp.float32) + b1_ref[l]
            inter = _gelu_tanh(inter)
            ffn = jnp.dot(inter, w2_ref[l], preferred_element_type=jnp.float32) + b2_ref[l]
            x = _layernorm(ffn + x, ln2_g_ref[l], ln2_b_ref[l])

        # ---- BERT pooler: tanh(W_p . h_cls + b_p) on the CLS rows (row b*S) ----
        cls_rows = jnp.concatenate([x[b * S:b * S + 1, :] for b in range(B)], axis=0)  # (B, H)
        pooled = jnp.tanh(
            jnp.dot(cls_rows, pool_w_ref[...], preferred_element_type=jnp.float32)
            + pool_b_ref[...])

        # nn.Dropout(p=0.1) is identity at inference (eval mode) -> no-op.
        # Classifier: lane-dense (B, 128) store; real logit is column 0 (weights zero-padded).
        logits_ref[...] = (
            jnp.dot(pooled, cls_w_ref[...], preferred_element_type=jnp.float32)
            + cls_b_ref[...]).astype(logits_ref.dtype)

    return kernel


def _fullspec(shape):
    nd = len(shape)

    def idx(i):
        return (0,) * nd

    return pl.BlockSpec(shape, idx)


# ---------------- parameter init (deterministic, synthetic) + packing ----------------

def _dense_init(key, fan_in, fan_out):
    w = jax.random.normal(key, (fan_in, fan_out), jnp.float32) * 0.02
    b = jnp.zeros((fan_out,), jnp.float32)
    return w, b


def init_params(key):
    keys = jax.random.split(key, 8 + N_LAYERS)
    params = {
        "word_emb": jax.random.normal(keys[0], (VOCAB, HIDDEN), jnp.float32) * 0.02,
        "pos_emb": jax.random.normal(keys[1], (MAX_POS, HIDDEN), jnp.float32) * 0.02,
        "type_emb": jax.random.normal(keys[2], (TYPE_VOCAB, HIDDEN), jnp.float32) * 0.02,
        "emb_ln_g": jnp.ones((HIDDEN,), jnp.float32),
        "emb_ln_b": jnp.zeros((HIDDEN,), jnp.float32),
        "layers": [],
    }
    for l in range(N_LAYERS):
        lk = jax.random.split(keys[3 + l], 6)
        wq, bq = _dense_init(lk[0], HIDDEN, HIDDEN)
        wk, bk = _dense_init(lk[1], HIDDEN, HIDDEN)
        wv, bv = _dense_init(lk[2], HIDDEN, HIDDEN)
        wo, bo = _dense_init(lk[3], HIDDEN, HIDDEN)
        w1, b1 = _dense_init(lk[4], HIDDEN, INTERMEDIATE)
        w2, b2 = _dense_init(lk[5], INTERMEDIATE, HIDDEN)
        params["layers"].append(dict(
            wq=wq, bq=bq, wk=wk, bk=bk, wv=wv, bv=bv, wo=wo, bo=bo,
            ln1_g=jnp.ones((HIDDEN,), jnp.float32), ln1_b=jnp.zeros((HIDDEN,), jnp.float32),
            w1=w1, b1=b1, w2=w2, b2=b2,
            ln2_g=jnp.ones((HIDDEN,), jnp.float32), ln2_b=jnp.zeros((HIDDEN,), jnp.float32),
        ))
    params["pool_w"], params["pool_b"] = _dense_init(keys[3 + N_LAYERS], HIDDEN, HIDDEN)
    params["cls_w"], params["cls_b"] = _dense_init(keys[4 + N_LAYERS], HIDDEN, 1)
    return params


def pack_params(params):
    """One-time packing: fused QKV weights, stacked per-layer tensors, pre-reshaped biases,
    lane-dense-padded classifier head."""
    layers = params["layers"]

    def stk(f):
        return jnp.stack([f(l) for l in layers])

    return dict(
        word_emb=params["word_emb"],
        pos_emb=params["pos_emb"],
        type_emb=params["type_emb"],
        emb_ln_g=params["emb_ln_g"].reshape(1, HIDDEN),
        emb_ln_b=params["emb_ln_b"].reshape(1, HIDDEN),
        wqkv=stk(lambda l: jnp.concatenate([l["wq"], l["wk"], l["wv"]], axis=1)),      # (L,H,3H)
        bqkv=stk(lambda l: jnp.concatenate([l["bq"], l["bk"], l["bv"]]).reshape(1, 3 * HIDDEN)),
        wo=stk(lambda l: l["wo"]),
        bo=stk(lambda l: l["bo"].reshape(1, HIDDEN)),
        ln1_g=stk(lambda l: l["ln1_g"].reshape(1, HIDDEN)),
        ln1_b=stk(lambda l: l["ln1_b"].reshape(1, HIDDEN)),
        w1=stk(lambda l: l["w1"]),
        b1=stk(lambda l: l["b1"].reshape(1, INTERMEDIATE)),
        w2=stk(lambda l: l["w2"]),
        b2=stk(lambda l: l["b2"].reshape(1, HIDDEN)),
        ln2_g=stk(lambda l: l["ln2_g"].reshape(1, HIDDEN)),
        ln2_b=stk(lambda l: l["ln2_b"].reshape(1, HIDDEN)),
        pool_w=params["pool_w"],
        pool_b=params["pool_b"].reshape(1, HIDDEN),
        cls_w_pad=jnp.pad(params["cls_w"], ((0, 0), (0, LOGIT_PAD - 1))),              # (H,128)
        cls_b_pad=jnp.pad(params["cls_b"], (0, LOGIT_PAD - 1)).reshape(1, LOGIT_PAD),  # (1,128)
    )


# ---------------- forward pass ----------------

def sentence_pair_classifier_forward(fused, input_ids, attn_masks, token_type_ids):
    B, S = input_ids.shape
    assert S <= MAX_POS, f"sequence length {S} exceeds MAX_POS={MAX_POS}"
    H = HIDDEN

    # embedding gathers are data-dependent -> XLA glue (sum of three embeddings, pre-LN)
    x_emb = (fused["word_emb"][input_ids]
             + fused["pos_emb"][None, :S, :]
             + fused["type_emb"][token_type_ids]).reshape(B * S, H).astype(jnp.float32)

    # additive attention mask (B, S)
    add_mask = (1.0 - attn_masks.astype(jnp.float32)) * -1e9

    operands = (
        x_emb, add_mask,
        fused["emb_ln_g"], fused["emb_ln_b"],
        fused["wqkv"], fused["bqkv"], fused["wo"], fused["bo"],
        fused["ln1_g"], fused["ln1_b"],
        fused["w1"], fused["b1"], fused["w2"], fused["b2"],
        fused["ln2_g"], fused["ln2_b"],
        fused["pool_w"], fused["pool_b"],
        fused["cls_w_pad"], fused["cls_b_pad"],
    )

    logits_pad = pl.pallas_call(
        _make_fused_kernel(B, S),
        out_shape=jax.ShapeDtypeStruct((B, LOGIT_PAD), jnp.float32),
        grid=(1,),
        in_specs=[_fullspec(op.shape) for op in operands],
        out_specs=_fullspec((B, LOGIT_PAD)),
        compiler_params=pltpu.CompilerParams(dimension_semantics=("arbitrary",)),
    )(*operands)

    return logits_pad[:, :1]   # (B, 1)


if __name__ == "__main__":
    B, S = 2, 8
    root = jax.random.PRNGKey(0)
    k_param, k_ids, k_type = jax.random.split(root, 3)

    params = init_params(k_param)
    fused = pack_params(params)

    input_ids = jax.random.randint(k_ids, (B, S), 0, VOCAB, dtype=jnp.int32)
    attn_masks = jnp.concatenate(
        [jnp.ones((B, S - 2), jnp.int32), jnp.zeros((B, 2), jnp.int32)], axis=1)
    token_type_ids = jnp.concatenate(
        [jnp.zeros((B, S // 2), jnp.int32), jnp.ones((B, S // 2), jnp.int32)], axis=1)

    logits = sentence_pair_classifier_forward(fused, input_ids, attn_masks, token_type_ids)
    logits = jax.block_until_ready(logits)
    assert logits.shape == (B, 1) and logits.dtype == jnp.float32
    print("KERNEL_OK")
</pallas_src>

<mosaic_0001>
module attributes {stable_mosaic.version = 11 : i64} {
  func.func @kernel(%arg0: i32, %arg1: memref<16x32xf32, #tpu.memory_space<vmem>>, %arg2: memref<2x8xf32, #tpu.memory_space<vmem>>, %arg3: memref<1x32xf32, #tpu.memory_space<vmem>>, %arg4: memref<1x32xf32, #tpu.memory_space<vmem>>, %arg5: memref<2x32x96xf32, #tpu.memory_space<vmem>>, %arg6: memref<2x1x96xf32, #tpu.memory_space<vmem>>, %arg7: memref<2x32x32xf32, #tpu.memory_space<vmem>>, %arg8: memref<2x1x32xf32, #tpu.memory_space<vmem>>, %arg9: memref<2x1x32xf32, #tpu.memory_space<vmem>>, %arg10: memref<2x1x32xf32, #tpu.memory_space<vmem>>, %arg11: memref<2x32x64xf32, #tpu.memory_space<vmem>>, %arg12: memref<2x1x64xf32, #tpu.memory_space<vmem>>, %arg13: memref<2x64x32xf32, #tpu.memory_space<vmem>>, %arg14: memref<2x1x32xf32, #tpu.memory_space<vmem>>, %arg15: memref<2x1x32xf32, #tpu.memory_space<vmem>>, %arg16: memref<2x1x32xf32, #tpu.memory_space<vmem>>, %arg17: memref<32x32xf32, #tpu.memory_space<vmem>>, %arg18: memref<1x32xf32, #tpu.memory_space<vmem>>, %arg19: memref<32x128xf32, #tpu.memory_space<vmem>>, %arg20: memref<1x128xf32, #tpu.memory_space<vmem>>, %arg21: memref<2x128xf32, #tpu.memory_space<vmem>>) attributes {dimension_semantics = [#tpu.dimension_semantics<arbitrary>], iteration_bounds = array<i64: 1>, scalar_prefetch = 0 : i64, scratch_operands = 0 : i64, tpu.core_type = #tpu.core_type<tc>, window_params = [{pipeline_mode = #tpu.pipeline_mode<synchronous>, transform_indices = @transform_0, window_bounds = array<i64: 16, 32>}, {pipeline_mode = #tpu.pipeline_mode<synchronous>, transform_indices = @transform_1, window_bounds = array<i64: 2, 8>}, {pipeline_mode = #tpu.pipeline_mode<synchronous>, transform_indices = @transform_2, window_bounds = array<i64: 1, 32>}, {pipeline_mode = #tpu.pipeline_mode<synchronous>, transform_indices = @transform_3, window_bounds = array<i64: 1, 32>}, {pipeline_mode = #tpu.pipeline_mode<synchronous>, transform_indices = @transform_4, window_bounds = array<i64: 2, 32, 96>}, {pipeline_mode = #tpu.pipeline_mode<synchronous>, transform_indices = @transform_5, window_bounds = array<i64: 2, 1, 96>}, {pipeline_mode = #tpu.pipeline_mode<synchronous>, transform_indices = @transform_6, window_bounds = array<i64: 2, 32, 32>}, {pipeline_mode = #tpu.pipeline_mode<synchronous>, transform_indices = @transform_7, window_bounds = array<i64: 2, 1, 32>}, {pipeline_mode = #tpu.pipeline_mode<synchronous>, transform_indices = @transform_8, window_bounds = array<i64: 2, 1, 32>}, {pipeline_mode = #tpu.pipeline_mode<synchronous>, transform_indices = @transform_9, window_bounds = array<i64: 2, 1, 32>}, {pipeline_mode = #tpu.pipeline_mode<synchronous>, transform_indices = @transform_10, window_bounds = array<i64: 2, 32, 64>}, {pipeline_mode = #tpu.pipeline_mode<synchronous>, transform_indices = @transform_11, window_bounds = array<i64: 2, 1, 64>}, {pipeline_mode = #tpu.pipeline_mode<synchronous>, transform_indices = @transform_12, window_bounds = array<i64: 2, 64, 32>}, {pipeline_mode = #tpu.pipeline_mode<synchronous>, transform_indices = @transform_13, window_bounds = array<i64: 2, 1, 32>}, {pipeline_mode = #tpu.pipeline_mode<synchronous>, transform_indices = @transform_14, window_bounds = array<i64: 2, 1, 32>}, {pipeline_mode = #tpu.pipeline_mode<synchronous>, transform_indices = @transform_15, window_bounds = array<i64: 2, 1, 32>}, {pipeline_mode = #tpu.pipeline_mode<synchronous>, transform_indices = @transform_16, window_bounds = array<i64: 32, 32>}, {pipeline_mode = #tpu.pipeline_mode<synchronous>, transform_indices = @transform_17, window_bounds = array<i64: 1, 32>}, {pipeline_mode = #tpu.pipeline_mode<synchronous>, transform_indices = @transform_18, window_bounds = array<i64: 32, 128>}, {pipeline_mode = #tpu.pipeline_mode<synchronous>, transform_indices = @transform_19, window_bounds = array<i64: 1, 128>}, {pipeline_mode = #tpu.pipeline_mode<synchronous>, transform_indices = @transform_20, window_bounds = array<i64: 2, 128>}]} {
    %c0 = arith.constant 0 : index
    %c0_0 = arith.constant 0 : index
    %0 = vector.load %arg1[%c0, %c0_0] : memref<16x32xf32, #tpu.memory_space<vmem>>, vector<16x32xf32>
    %c0_1 = arith.constant 0 : index
    %c0_2 = arith.constant 0 : index
    %1 = vector.load %arg3[%c0_1, %c0_2] : memref<1x32xf32, #tpu.memory_space<vmem>>, vector<1x32xf32>
    %c0_3 = arith.constant 0 : index
    %c0_4 = arith.constant 0 : index
    %2 = vector.load %arg4[%c0_3, %c0_4] : memref<1x32xf32, #tpu.memory_space<vmem>>, vector<1x32xf32>
    %cst = arith.constant dense<0.000000e+00> : vector<16xf32>
    %3 = vector.multi_reduction <add>, %0, %cst [1] : vector<16x32xf32> to vector<16xf32>
    %4 = vector.shape_cast %3 : vector<16xf32> to vector<16x1xf32>
    %cst_5 = arith.constant 3.200000e+01 : f32
    %5 = vector.broadcast %cst_5 : f32 to vector<16x1xf32>
    %6 = arith.divf %4, %5 : vector<16x1xf32>
    %7 = vector.broadcast %6 : vector<16x1xf32> to vector<16x32xf32>
    %8 = arith.subf %0, %7 : vector<16x32xf32>
    %9 = arith.mulf %8, %8 : vector<16x32xf32>
    %cst_6 = arith.constant dense<0.000000e+00> : vector<16xf32>
    %10 = vector.multi_reduction <add>, %9, %cst_6 [1] : vector<16x32xf32> to vector<16xf32>
    %11 = vector.shape_cast %10 : vector<16xf32> to vector<16x1xf32>
    %cst_7 = arith.constant 3.200000e+01 : f32
    %12 = vector.broadcast %cst_7 : f32 to vector<16x1xf32>
    %13 = arith.divf %11, %12 : vector<16x1xf32>
    %14 = vector.broadcast %6 : vector<16x1xf32> to vector<16x32xf32>
    %15 = arith.subf %0, %14 : vector<16x32xf32>
    %cst_8 = arith.constant 9.99999996E-13 : f32
    %16 = vector.broadcast %cst_8 : f32 to vector<16x1xf32>
    %17 = arith.addf %13, %16 : vector<16x1xf32>
    %18 = math.rsqrt %17 : vector<16x1xf32>
    %19 = vector.broadcast %18 : vector<16x1xf32> to vector<16x32xf32>
    %20 = arith.mulf %15, %19 : vector<16x32xf32>
    %21 = vector.broadcast %1 : vector<1x32xf32> to vector<16x32xf32>
    %22 = arith.mulf %20, %21 : vector<16x32xf32>
    %23 = vector.broadcast %2 : vector<1x32xf32> to vector<16x32xf32>
    %24 = arith.addf %22, %23 : vector<16x32xf32>
    %c0_9 = arith.constant 0 : index
    %c0_10 = arith.constant 0 : index
    %25 = vector.load %arg2[%c0_9, %c0_10] : memref<2x8xf32, #tpu.memory_space<vmem>>, vector<2x8xf32>
    %c0_11 = arith.constant 0 : index
    %c0_12 = arith.constant 0 : index
    %c0_13 = arith.constant 0 : index
    %26 = vector.load %arg5[%c0_11, %c0_12, %c0_13] : memref<2x32x96xf32, #tpu.memory_space<vmem>>, vector<1x32x96xf32>
    %27 = vector.shape_cast %26 : vector<1x32x96xf32> to vector<32x96xf32>
    %cst_14 = arith.constant dense<0.000000e+00> : vector<16x96xf32>
    %28 = tpu.matmul %24, %27, %cst_14 {dimension_numbers = #tpu.dot_dimension_numbers<[1], [0], [0], [1], [0, 0, 1, 1], [], []>} : vector<16x32xf32>, vector<32x96xf32>, vector<16x96xf32> -> vector<16x96xf32>
    %c0_15 = arith.constant 0 : index
    %c0_16 = arith.constant 0 : index
    %c0_17 = arith.constant 0 : index
    %29 = vector.load %arg6[%c0_15, %c0_16, %c0_17] : memref<2x1x96xf32, #tpu.memory_space<vmem>>, vector<1x1x96xf32>
    %30 = vector.shape_cast %29 : vector<1x1x96xf32> to vector<1x96xf32>
    %31 = vector.broadcast %30 : vector<1x96xf32> to vector<16x96xf32>
    %32 = arith.addf %28, %31 : vector<16x96xf32>
    %33 = vector.extract_strided_slice %32 {offsets = [0, 0], sizes = [16, 32], strides = [1, 1]} : vector<16x96xf32> to vector<16x32xf32>
    %34 = vector.extract_strided_slice %32 {offsets = [0, 32], sizes = [16, 32], strides = [1, 1]} : vector<16x96xf32> to vector<16x32xf32>
    %35 = vector.extract_strided_slice %32 {offsets = [0, 64], sizes = [16, 32], strides = [1, 1]} : vector<16x96xf32> to vector<16x32xf32>
    %36 = vector.extract_strided_slice %25 {offsets = [0, 0], sizes = [1, 8], strides = [1, 1]} : vector<2x8xf32> to vector<1x8xf32>
    %37 = vector.extract_strided_slice %33 {offsets = [0, 0], sizes = [8, 16], strides = [1, 1]} : vector<16x32xf32> to vector<8x16xf32>
    %38 = vector.extract_strided_slice %34 {offsets = [0, 0], sizes = [8, 16], strides = [1, 1]} : vector<16x32xf32> to vector<8x16xf32>
    %39 = vector.extract_strided_slice %35 {offsets = [0, 0], sizes = [8, 16], strides = [1, 1]} : vector<16x32xf32> to vector<8x16xf32>
    %40 = tpu.transpose %38, [1, 0] : vector<8x16xf32> -> vector<16x8xf32>
    %cst_18 = arith.constant dense<0.000000e+00> : vector<8x8xf32>
    %41 = tpu.matmul %37, %40, %cst_18 {dimension_numbers = #tpu.dot_dimension_numbers<[1], [0], [0], [1], [0, 0, 1, 1], [], []>} : vector<8x16xf32>, vector<16x8xf32>, vector<8x8xf32> -> vector<8x8xf32>
    %cst_19 = arith.constant 2.500000e-01 : f32
    %42 = vector.broadcast %cst_19 : f32 to vector<8x8xf32>
    %43 = arith.mulf %41, %42 : vector<8x8xf32>
    %44 = vector.broadcast %36 : vector<1x8xf32> to vector<8x8xf32>
    %45 = arith.addf %43, %44 : vector<8x8xf32>
    %cst_20 = arith.constant dense<0xFF800000> : vector<8xf32>
    %46 = vector.multi_reduction <maximumf>, %45, %cst_20 [1] : vector<8x8xf32> to vector<8xf32>
    %47 = vector.shape_cast %46 : vector<8xf32> to vector<8x1xf32>
    %48 = vector.broadcast %47 : vector<8x1xf32> to vector<8x8xf32>
    %49 = arith.subf %45, %48 : vector<8x8xf32>
    %50 = math.exp %49 : vector<8x8xf32>
    %cst_21 = arith.constant dense<0.000000e+00> : vector<8xf32>
    %51 = vector.multi_reduction <add>, %50, %cst_21 [1] : vector<8x8xf32> to vector<8xf32>
    %52 = vector.shape_cast %51 : vector<8xf32> to vector<8x1xf32>
    %53 = vector.broadcast %52 : vector<8x1xf32> to vector<8x8xf32>
    %54 = arith.divf %50, %53 : vector<8x8xf32>
    %cst_22 = arith.constant dense<0.000000e+00> : vector<8x16xf32>
    %55 = tpu.matmul %54, %39, %cst_22 {dimension_numbers = #tpu.dot_dimension_numbers<[1], [0], [0], [1], [0, 0, 1, 1], [], []>} : vector<8x8xf32>, vector<8x16xf32>, vector<8x16xf32> -> vector<8x16xf32>
    %56 = vector.extract_strided_slice %33 {offsets = [0, 16], sizes = [8, 16], strides = [1, 1]} : vector<16x32xf32> to vector<8x16xf32>
    %57 = vector.extract_strided_slice %34 {offsets = [0, 16], sizes = [8, 16], strides = [1, 1]} : vector<16x32xf32> to vector<8x16xf32>
    %58 = vector.extract_strided_slice %35 {offsets = [0, 16], sizes = [8, 16], strides = [1, 1]} : vector<16x32xf32> to vector<8x16xf32>
    %59 = tpu.transpose %57, [1, 0] : vector<8x16xf32> -> vector<16x8xf32>
    %cst_23 = arith.constant dense<0.000000e+00> : vector<8x8xf32>
    %60 = tpu.matmul %56, %59, %cst_23 {dimension_numbers = #tpu.dot_dimension_numbers<[1], [0], [0], [1], [0, 0, 1, 1], [], []>} : vector<8x16xf32>, vector<16x8xf32>, vector<8x8xf32> -> vector<8x8xf32>
    %cst_24 = arith.constant 2.500000e-01 : f32
    %61 = vector.broadcast %cst_24 : f32 to vector<8x8xf32>
    %62 = arith.mulf %60, %61 : vector<8x8xf32>
    %63 = vector.broadcast %36 : vector<1x8xf32> to vector<8x8xf32>
    %64 = arith.addf %62, %63 : vector<8x8xf32>
    %cst_25 = arith.constant dense<0xFF800000> : vector<8xf32>
    %65 = vector.multi_reduction <maximumf>, %64, %cst_25 [1] : vector<8x8xf32> to vector<8xf32>
    %66 = vector.shape_cast %65 : vector<8xf32> to vector<8x1xf32>
    %67 = vector.broadcast %66 : vector<8x1xf32> to vector<8x8xf32>
    %68 = arith.subf %64, %67 : vector<8x8xf32>
    %69 = math.exp %68 : vector<8x8xf32>
    %cst_26 = arith.constant dense<0.000000e+00> : vector<8xf32>
    %70 = vector.multi_reduction <add>, %69, %cst_26 [1] : vector<8x8xf32> to vector<8xf32>
    %71 = vector.shape_cast %70 : vector<8xf32> to vector<8x1xf32>
    %72 = vector.broadcast %71 : vector<8x1xf32> to vector<8x8xf32>
    %73 = arith.divf %69, %72 : vector<8x8xf32>
    %cst_27 = arith.constant dense<0.000000e+00> : vector<8x16xf32>
    %74 = tpu.matmul %73, %58, %cst_27 {dimension_numbers = #tpu.dot_dimension_numbers<[1], [0], [0], [1], [0, 0, 1, 1], [], []>} : vector<8x8xf32>, vector<8x16xf32>, vector<8x16xf32> -> vector<8x16xf32>
    %75 = tpu.concatenate %55, %74 in 1 : vector<8x16xf32>, vector<8x16xf32> -> vector<8x32xf32>
    %76 = vector.extract_strided_slice %25 {offsets = [1, 0], sizes = [1, 8], strides = [1, 1]} : vector<2x8xf32> to vector<1x8xf32>
    %77 = vector.extract_strided_slice %33 {offsets = [8, 0], sizes = [8, 16], strides = [1, 1]} : vector<16x32xf32> to vector<8x16xf32>
    %78 = vector.extract_strided_slice %34 {offsets = [8, 0], sizes = [8, 16], strides = [1, 1]} : vector<16x32xf32> to vector<8x16xf32>
    %79 = vector.extract_strided_slice %35 {offsets = [8, 0], sizes = [8, 16], strides = [1, 1]} : vector<16x32xf32> to vector<8x16xf32>
    %80 = tpu.transpose %78, [1, 0] : vector<8x16xf32> -> vector<16x8xf32>
    %cst_28 = arith.constant dense<0.000000e+00> : vector<8x8xf32>
    %81 = tpu.matmul %77, %80, %cst_28 {dimension_numbers = #tpu.dot_dimension_numbers<[1], [0], [0], [1], [0, 0, 1, 1], [], []>} : vector<8x16xf32>, vector<16x8xf32>, vector<8x8xf32> -> vector<8x8xf32>
    %cst_29 = arith.constant 2.500000e-01 : f32
    %82 = vector.broadcast %cst_29 : f32 to vector<8x8xf32>
    %83 = arith.mulf %81, %82 : vector<8x8xf32>
    %84 = vector.broadcast %76 : vector<1x8xf32> to vector<8x8xf32>
    %85 = arith.addf %83, %84 : vector<8x8xf32>
    %cst_30 = arith.constant dense<0xFF800000> : vector<8xf32>
    %86 = vector.multi_reduction <maximumf>, %85, %cst_30 [1] : vector<8x8xf32> to vector<8xf32>
    %87 = vector.shape_cast %86 : vector<8xf32> to vector<8x1xf32>
    %88 = vector.broadcast %87 : vector<8x1xf32> to vector<8x8xf32>
    %89 = arith.subf %85, %88 : vector<8x8xf32>
    %90 = math.exp %89 : vector<8x8xf32>
    %cst_31 = arith.constant dense<0.000000e+00> : vector<8xf32>
    %91 = vector.multi_reduction <add>, %90, %cst_31 [1] : vector<8x8xf32> to vector<8xf32>
    %92 = vector.shape_cast %91 : vector<8xf32> to vector<8x1xf32>
    %93 = vector.broadcast %92 : vector<8x1xf32> to vector<8x8xf32>
    %94 = arith.divf %90, %93 : vector<8x8xf32>
    %cst_32 = arith.constant dense<0.000000e+00> : vector<8x16xf32>
    %95 = tpu.matmul %94, %79, %cst_32 {dimension_numbers = #tpu.dot_dimension_numbers<[1], [0], [0], [1], [0, 0, 1, 1], [], []>} : vector<8x8xf32>, vector<8x16xf32>, vector<8x16xf32> -> vector<8x16xf32>
    %96 = vector.extract_strided_slice %33 {offsets = [8, 16], sizes = [8, 16], strides = [1, 1]} : vector<16x32xf32> to vector<8x16xf32>
    %97 = vector.extract_strided_slice %34 {offsets = [8, 16], sizes = [8, 16], strides = [1, 1]} : vector<16x32xf32> to vector<8x16xf32>
    %98 = vector.extract_strided_slice %35 {offsets = [8, 16], sizes = [8, 16], strides = [1, 1]} : vector<16x32xf32> to vector<8x16xf32>
    %99 = tpu.transpose %97, [1, 0] : vector<8x16xf32> -> vector<16x8xf32>
    %cst_33 = arith.constant dense<0.000000e+00> : vector<8x8xf32>
    %100 = tpu.matmul %96, %99, %cst_33 {dimension_numbers = #tpu.dot_dimension_numbers<[1], [0], [0], [1], [0, 0, 1, 1], [], []>} : vector<8x16xf32>, vector<16x8xf32>, vector<8x8xf32> -> vector<8x8xf32>
    %cst_34 = arith.constant 2.500000e-01 : f32
    %101 = vector.broadcast %cst_34 : f32 to vector<8x8xf32>
    %102 = arith.mulf %100, %101 : vector<8x8xf32>
    %103 = vector.broadcast %76 : vector<1x8xf32> to vector<8x8xf32>
    %104 = arith.addf %102, %103 : vector<8x8xf32>
    %cst_35 = arith.constant dense<0xFF800000> : vector<8xf32>
    %105 = vector.multi_reduction <maximumf>, %104, %cst_35 [1] : vector<8x8xf32> to vector<8xf32>
    %106 = vector.shape_cast %105 : vector<8xf32> to vector<8x1xf32>
    %107 = vector.broadcast %106 : vector<8x1xf32> to vector<8x8xf32>
    %108 = arith.subf %104, %107 : vector<8x8xf32>
    %109 = math.exp %108 : vector<8x8xf32>
    %cst_36 = arith.constant dense<0.000000e+00> : vector<8xf32>
    %110 = vector.multi_reduction <add>, %109, %cst_36 [1] : vector<8x8xf32> to vector<8xf32>
    %111 = vector.shape_cast %110 : vector<8xf32> to vector<8x1xf32>
    %112 = vector.broadcast %111 : vector<8x1xf32> to vector<8x8xf32>
    %113 = arith.divf %109, %112 : vector<8x8xf32>
    %cst_37 = arith.constant dense<0.000000e+00> : vector<8x16xf32>
    %114 = tpu.matmul %113, %98, %cst_37 {dimension_numbers = #tpu.dot_dimension_numbers<[1], [0], [0], [1], [0, 0, 1, 1], [], []>} : vector<8x8xf32>, vector<8x16xf32>, vector<8x16xf32> -> vector<8x16xf32>
    %115 = tpu.concatenate %95, %114 in 1 : vector<8x16xf32>, vector<8x16xf32> -> vector<8x32xf32>
    %116 = tpu.concatenate %75, %115 in 0 : vector<8x32xf32>, vector<8x32xf32> -> vector<16x32xf32>
    %c0_38 = arith.constant 0 : index
    %c0_39 = arith.constant 0 : index
    %c0_40 = arith.constant 0 : index
    %117 = vector.load %arg7[%c0_38, %c0_39, %c0_40] : memref<2x32x32xf32, #tpu.memory_space<vmem>>, vector<1x32x32xf32>
    %118 = vector.shape_cast %117 : vector<1x32x32xf32> to vector<32x32xf32>
    %cst_41 = arith.constant dense<0.000000e+00> : vector<16x32xf32>
    %119 = tpu.matmul %116, %118, %cst_41 {dimension_numbers = #tpu.dot_dimension_numbers<[1], [0], [0], [1], [0, 0, 1, 1], [], []>} : vector<16x32xf32>, vector<32x32xf32>, vector<16x32xf32> -> vector<16x32xf32>
    %c0_42 = arith.constant 0 : index
    %c0_43 = arith.constant 0 : index
    %c0_44 = arith.constant 0 : index
    %120 = vector.load %arg8[%c0_42, %c0_43, %c0_44] : memref<2x1x32xf32, #tpu.memory_space<vmem>>, vector<1x1x32xf32>
    %121 = vector.shape_cast %120 : vector<1x1x32xf32> to vector<1x32xf32>
    %122 = vector.broadcast %121 : vector<1x32xf32> to vector<16x32xf32>
    %123 = arith.addf %119, %122 : vector<16x32xf32>
    %124 = arith.addf %123, %24 : vector<16x32xf32>
    %c0_45 = arith.constant 0 : index
    %c0_46 = arith.constant 0 : index
    %c0_47 = arith.constant 0 : index
    %125 = vector.load %arg9[%c0_45, %c0_46, %c0_47] : memref<2x1x32xf32, #tpu.memory_space<vmem>>, vector<1x1x32xf32>
    %126 = vector.shape_cast %125 : vector<1x1x32xf32> to vector<1x32xf32>
    %c0_48 = arith.constant 0 : index
    %c0_49 = arith.constant 0 : index
    %c0_50 = arith.constant 0 : index
    %127 = vector.load %arg10[%c0_48, %c0_49, %c0_50] : memref<2x1x32xf32, #tpu.memory_space<vmem>>, vector<1x1x32xf32>
    %128 = vector.shape_cast %127 : vector<1x1x32xf32> to vector<1x32xf32>
    %cst_51 = arith.constant dense<0.000000e+00> : vector<16xf32>
    %129 = vector.multi_reduction <add>, %124, %cst_51 [1] : vector<16x32xf32> to vector<16xf32>
    %130 = vector.shape_cast %129 : vector<16xf32> to vector<16x1xf32>
    %cst_52 = arith.constant 3.200000e+01 : f32
    %131 = vector.broadcast %cst_52 : f32 to vector<16x1xf32>
    %132 = arith.divf %130, %131 : vector<16x1xf32>
    %133 = vector.broadcast %132 : vector<16x1xf32> to vector<16x32xf32>
    %134 = arith.subf %124, %133 : vector<16x32xf32>
    %135 = arith.mulf %134, %134 : vector<16x32xf32>
    %cst_53 = arith.constant dense<0.000000e+00> : vector<16xf32>
    %136 = vector.multi_reduction <add>, %135, %cst_53 [1] : vector<16x32xf32> to vector<16xf32>
    %137 = vector.shape_cast %136 : vector<16xf32> to vector<16x1xf32>
    %cst_54 = arith.constant 3.200000e+01 : f32
    %138 = vector.broadcast %cst_54 : f32 to vector<16x1xf32>
    %139 = arith.divf %137, %138 : vector<16x1xf32>
    %140 = vector.broadcast %132 : vector<16x1xf32> to vector<16x32xf32>
    %141 = arith.subf %124, %140 : vector<16x32xf32>
    %cst_55 = arith.constant 9.99999996E-13 : f32
    %142 = vector.broadcast %cst_55 : f32 to vector<16x1xf32>
    %143 = arith.addf %139, %142 : vector<16x1xf32>
    %144 = math.rsqrt %143 : vector<16x1xf32>
    %145 = vector.broadcast %144 : vector<16x1xf32> to vector<16x32xf32>
    %146 = arith.mulf %141, %145 : vector<16x32xf32>
    %147 = vector.broadcast %126 : vector<1x32xf32> to vector<16x32xf32>
    %148 = arith.mulf %146, %147 : vector<16x32xf32>
    %149 = vector.broadcast %128 : vector<1x32xf32> to vector<16x32xf32>
    %150 = arith.addf %148, %149 : vector<16x32xf32>
    %c0_56 = arith.constant 0 : index
    %c0_57 = arith.constant 0 : index
    %c0_58 = arith.constant 0 : index
    %151 = vector.load %arg11[%c0_56, %c0_57, %c0_58] : memref<2x32x64xf32, #tpu.memory_space<vmem>>, vector<1x32x64xf32>
    %152 = vector.shape_cast %151 : vector<1x32x64xf32> to vector<32x64xf32>
    %cst_59 = arith.constant dense<0.000000e+00> : vector<16x64xf32>
    %153 = tpu.matmul %150, %152, %cst_59 {dimension_numbers = #tpu.dot_dimension_numbers<[1], [0], [0], [1], [0, 0, 1, 1], [], []>} : vector<16x32xf32>, vector<32x64xf32>, vector<16x64xf32> -> vector<16x64xf32>
    %c0_60 = arith.constant 0 : index
    %c0_61 = arith.constant 0 : index
    %c0_62 = arith.constant 0 : index
    %154 = vector.load %arg12[%c0_60, %c0_61, %c0_62] : memref<2x1x64xf32, #tpu.memory_space<vmem>>, vector<1x1x64xf32>
    %155 = vector.shape_cast %154 : vector<1x1x64xf32> to vector<1x64xf32>
    %156 = vector.broadcast %155 : vector<1x64xf32> to vector<16x64xf32>
    %157 = arith.addf %153, %156 : vector<16x64xf32>
    %cst_63 = arith.constant 5.000000e-01 : f32
    %158 = vector.broadcast %cst_63 : f32 to vector<16x64xf32>
    %159 = arith.mulf %158, %157 : vector<16x64xf32>
    %cst_64 = arith.constant 4.471500e-02 : f32
    %160 = vector.broadcast %cst_64 : f32 to vector<16x64xf32>
    %161 = arith.mulf %160, %157 : vector<16x64xf32>
    %162 = arith.mulf %161, %157 : vector<16x64xf32>
    %163 = arith.mulf %162, %157 : vector<16x64xf32>
    %164 = arith.addf %157, %163 : vector<16x64xf32>
    %cst_65 = arith.constant 0.797884583 : f32
    %165 = vector.broadcast %cst_65 : f32 to vector<16x64xf32>
    %166 = arith.mulf %165, %164 : vector<16x64xf32>
    %167 = math.tanh %166 : vector<16x64xf32>
    %cst_66 = arith.constant 1.000000e+00 : f32
    %168 = vector.broadcast %cst_66 : f32 to vector<16x64xf32>
    %169 = arith.addf %168, %167 : vector<16x64xf32>
    %170 = arith.mulf %159, %169 : vector<16x64xf32>
    %c0_67 = arith.constant 0 : index
    %c0_68 = arith.constant 0 : index
    %c0_69 = arith.constant 0 : index
    %171 = vector.load %arg13[%c0_67, %c0_68, %c0_69] : memref<2x64x32xf32, #tpu.memory_space<vmem>>, vector<1x64x32xf32>
    %172 = vector.shape_cast %171 : vector<1x64x32xf32> to vector<64x32xf32>
    %cst_70 = arith.constant dense<0.000000e+00> : vector<16x32xf32>
    %173 = tpu.matmul %170, %172, %cst_70 {dimension_numbers = #tpu.dot_dimension_numbers<[1], [0], [0], [1], [0, 0, 1, 1], [], []>} : vector<16x64xf32>, vector<64x32xf32>, vector<16x32xf32> -> vector<16x32xf32>
    %c0_71 = arith.constant 0 : index
    %c0_72 = arith.constant 0 : index
    %c0_73 = arith.constant 0 : index
    %174 = vector.load %arg14[%c0_71, %c0_72, %c0_73] : memref<2x1x32xf32, #tpu.memory_space<vmem>>, vector<1x1x32xf32>
    %175 = vector.shape_cast %174 : vector<1x1x32xf32> to vector<1x32xf32>
    %176 = vector.broadcast %175 : vector<1x32xf32> to vector<16x32xf32>
    %177 = arith.addf %173, %176 : vector<16x32xf32>
    %178 = arith.addf %177, %150 : vector<16x32xf32>
    %c0_74 = arith.constant 0 : index
    %c0_75 = arith.constant 0 : index
    %c0_76 = arith.constant 0 : index
    %179 = vector.load %arg15[%c0_74, %c0_75, %c0_76] : memref<2x1x32xf32, #tpu.memory_space<vmem>>, vector<1x1x32xf32>
    %180 = vector.shape_cast %179 : vector<1x1x32xf32> to vector<1x32xf32>
    %c0_77 = arith.constant 0 : index
    %c0_78 = arith.constant 0 : index
    %c0_79 = arith.constant 0 : index
    %181 = vector.load %arg16[%c0_77, %c0_78, %c0_79] : memref<2x1x32xf32, #tpu.memory_space<vmem>>, vector<1x1x32xf32>
    %182 = vector.shape_cast %181 : vector<1x1x32xf32> to vector<1x32xf32>
    %cst_80 = arith.constant dense<0.000000e+00> : vector<16xf32>
    %183 = vector.multi_reduction <add>, %178, %cst_80 [1] : vector<16x32xf32> to vector<16xf32>
    %184 = vector.shape_cast %183 : vector<16xf32> to vector<16x1xf32>
    %cst_81 = arith.constant 3.200000e+01 : f32
    %185 = vector.broadcast %cst_81 : f32 to vector<16x1xf32>
    %186 = arith.divf %184, %185 : vector<16x1xf32>
    %187 = vector.broadcast %186 : vector<16x1xf32> to vector<16x32xf32>
    %188 = arith.subf %178, %187 : vector<16x32xf32>
    %189 = arith.mulf %188, %188 : vector<16x32xf32>
    %cst_82 = arith.constant dense<0.000000e+00> : vector<16xf32>
    %190 = vector.multi_reduction <add>, %189, %cst_82 [1] : vector<16x32xf32> to vector<16xf32>
    %191 = vector.shape_cast %190 : vector<16xf32> to vector<16x1xf32>
    %cst_83 = arith.constant 3.200000e+01 : f32
    %192 = vector.broadcast %cst_83 : f32 to vector<16x1xf32>
    %193 = arith.divf %191, %192 : vector<16x1xf32>
    %194 = vector.broadcast %186 : vector<16x1xf32> to vector<16x32xf32>
    %195 = arith.subf %178, %194 : vector<16x32xf32>
    %cst_84 = arith.constant 9.99999996E-13 : f32
    %196 = vector.broadcast %cst_84 : f32 to vector<16x1xf32>
    %197 = arith.addf %193, %196 : vector<16x1xf32>
    %198 = math.rsqrt %197 : vector<16x1xf32>
    %199 = vector.broadcast %198 : vector<16x1xf32> to vector<16x32xf32>
    %200 = arith.mulf %195, %199 : vector<16x32xf32>
    %201 = vector.broadcast %180 : vector<1x32xf32> to vector<16x32xf32>
    %202 = arith.mulf %200, %201 : vector<16x32xf32>
    %203 = vector.broadcast %182 : vector<1x32xf32> to vector<16x32xf32>
    %204 = arith.addf %202, %203 : vector<16x32xf32>
    %c1 = arith.constant 1 : index
    %c0_85 = arith.constant 0 : index
    %c0_86 = arith.constant 0 : index
    %205 = vector.load %arg5[%c1, %c0_85, %c0_86] : memref<2x32x96xf32, #tpu.memory_space<vmem>>, vector<1x32x96xf32>
    %206 = vector.shape_cast %205 : vector<1x32x96xf32> to vector<32x96xf32>
    %cst_87 = arith.constant dense<0.000000e+00> : vector<16x96xf32>
    %207 = tpu.matmul %204, %206, %cst_87 {dimension_numbers = #tpu.dot_dimension_numbers<[1], [0], [0], [1], [0, 0, 1, 1], [], []>} : vector<16x32xf32>, vector<32x96xf32>, vector<16x96xf32> -> vector<16x96xf32>
    %c1_88 = arith.constant 1 : index
    %c0_89 = arith.constant 0 : index
    %c0_90 = arith.constant 0 : index
    %208 = vector.load %arg6[%c1_88, %c0_89, %c0_90] : memref<2x1x96xf32, #tpu.memory_space<vmem>>, vector<1x1x96xf32>
    %209 = vector.shape_cast %208 : vector<1x1x96xf32> to vector<1x96xf32>
    %210 = vector.broadcast %209 : vector<1x96xf32> to vector<16x96xf32>
    %211 = arith.addf %207, %210 : vector<16x96xf32>
    %212 = vector.extract_strided_slice %211 {offsets = [0, 0], sizes = [16, 32], strides = [1, 1]} : vector<16x96xf32> to vector<16x32xf32>
    %213 = vector.extract_strided_slice %211 {offsets = [0, 32], sizes = [16, 32], strides = [1, 1]} : vector<16x96xf32> to vector<16x32xf32>
    %214 = vector.extract_strided_slice %211 {offsets = [0, 64], sizes = [16, 32], strides = [1, 1]} : vector<16x96xf32> to vector<16x32xf32>
    %215 = vector.extract_strided_slice %25 {offsets = [0, 0], sizes = [1, 8], strides = [1, 1]} : vector<2x8xf32> to vector<1x8xf32>
    %216 = vector.extract_strided_slice %212 {offsets = [0, 0], sizes = [8, 16], strides = [1, 1]} : vector<16x32xf32> to vector<8x16xf32>
    %217 = vector.extract_strided_slice %213 {offsets = [0, 0], sizes = [8, 16], strides = [1, 1]} : vector<16x32xf32> to vector<8x16xf32>
    %218 = vector.extract_strided_slice %214 {offsets = [0, 0], sizes = [8, 16], strides = [1, 1]} : vector<16x32xf32> to vector<8x16xf32>
    %219 = tpu.transpose %217, [1, 0] : vector<8x16xf32> -> vector<16x8xf32>
    %cst_91 = arith.constant dense<0.000000e+00> : vector<8x8xf32>
    %220 = tpu.matmul %216, %219, %cst_91 {dimension_numbers = #tpu.dot_dimension_numbers<[1], [0], [0], [1], [0, 0, 1, 1], [], []>} : vector<8x16xf32>, vector<16x8xf32>, vector<8x8xf32> -> vector<8x8xf32>
    %cst_92 = arith.constant 2.500000e-01 : f32
    %221 = vector.broadcast %cst_92 : f32 to vector<8x8xf32>
    %222 = arith.mulf %220, %221 : vector<8x8xf32>
    %223 = vector.broadcast %215 : vector<1x8xf32> to vector<8x8xf32>
    %224 = arith.addf %222, %223 : vector<8x8xf32>
    %cst_93 = arith.constant dense<0xFF800000> : vector<8xf32>
    %225 = vector.multi_reduction <maximumf>, %224, %cst_93 [1] : vector<8x8xf32> to vector<8xf32>
    %226 = vector.shape_cast %225 : vector<8xf32> to vector<8x1xf32>
    %227 = vector.broadcast %226 : vector<8x1xf32> to vector<8x8xf32>
    %228 = arith.subf %224, %227 : vector<8x8xf32>
    %229 = math.exp %228 : vector<8x8xf32>
    %cst_94 = arith.constant dense<0.000000e+00> : vector<8xf32>
    %230 = vector.multi_reduction <add>, %229, %cst_94 [1] : vector<8x8xf32> to vector<8xf32>
    %231 = vector.shape_cast %230 : vector<8xf32> to vector<8x1xf32>
    %232 = vector.broadcast %231 : vector<8x1xf32> to vector<8x8xf32>
    %233 = arith.divf %229, %232 : vector<8x8xf32>
    %cst_95 = arith.constant dense<0.000000e+00> : vector<8x16xf32>
    %234 = tpu.matmul %233, %218, %cst_95 {dimension_numbers = #tpu.dot_dimension_numbers<[1], [0], [0], [1], [0, 0, 1, 1], [], []>} : vector<8x8xf32>, vector<8x16xf32>, vector<8x16xf32> -> vector<8x16xf32>
    %235 = vector.extract_strided_slice %212 {offsets = [0, 16], sizes = [8, 16], strides = [1, 1]} : vector<16x32xf32> to vector<8x16xf32>
    %236 = vector.extract_strided_slice %213 {offsets = [0, 16], sizes = [8, 16], strides = [1, 1]} : vector<16x32xf32> to vector<8x16xf32>
    %237 = vector.extract_strided_slice %214 {offsets = [0, 16], sizes = [8, 16], strides = [1, 1]} : vector<16x32xf32> to vector<8x16xf32>
    %238 = tpu.transpose %236, [1, 0] : vector<8x16xf32> -> vector<16x8xf32>
    %cst_96 = arith.constant dense<0.000000e+00> : vector<8x8xf32>
    %239 = tpu.matmul %235, %238, %cst_96 {dimension_numbers = #tpu.dot_dimension_numbers<[1], [0], [0], [1], [0, 0, 1, 1], [], []>} : vector<8x16xf32>, vector<16x8xf32>, vector<8x8xf32> -> vector<8x8xf32>
    %cst_97 = arith.constant 2.500000e-01 : f32
    %240 = vector.broadcast %cst_97 : f32 to vector<8x8xf32>
    %241 = arith.mulf %239, %240 : vector<8x8xf32>
    %242 = vector.broadcast %215 : vector<1x8xf32> to vector<8x8xf32>
    %243 = arith.addf %241, %242 : vector<8x8xf32>
    %cst_98 = arith.constant dense<0xFF800000> : vector<8xf32>
    %244 = vector.multi_reduction <maximumf>, %243, %cst_98 [1] : vector<8x8xf32> to vector<8xf32>
    %245 = vector.shape_cast %244 : vector<8xf32> to vector<8x1xf32>
    %246 = vector.broadcast %245 : vector<8x1xf32> to vector<8x8xf32>
    %247 = arith.subf %243, %246 : vector<8x8xf32>
    %248 = math.exp %247 : vector<8x8xf32>
    %cst_99 = arith.constant dense<0.000000e+00> : vector<8xf32>
    %249 = vector.multi_reduction <add>, %248, %cst_99 [1] : vector<8x8xf32> to vector<8xf32>
    %250 = vector.shape_cast %249 : vector<8xf32> to vector<8x1xf32>
    %251 = vector.broadcast %250 : vector<8x1xf32> to vector<8x8xf32>
    %252 = arith.divf %248, %251 : vector<8x8xf32>
    %cst_100 = arith.constant dense<0.000000e+00> : vector<8x16xf32>
    %253 = tpu.matmul %252, %237, %cst_100 {dimension_numbers = #tpu.dot_dimension_numbers<[1], [0], [0], [1], [0, 0, 1, 1], [], []>} : vector<8x8xf32>, vector<8x16xf32>, vector<8x16xf32> -> vector<8x16xf32>
    %254 = tpu.concatenate %234, %253 in 1 : vector<8x16xf32>, vector<8x16xf32> -> vector<8x32xf32>
    %255 = vector.extract_strided_slice %25 {offsets = [1, 0], sizes = [1, 8], strides = [1, 1]} : vector<2x8xf32> to vector<1x8xf32>
    %256 = vector.extract_strided_slice %212 {offsets = [8, 0], sizes = [8, 16], strides = [1, 1]} : vector<16x32xf32> to vector<8x16xf32>
    %257 = vector.extract_strided_slice %213 {offsets = [8, 0], sizes = [8, 16], strides = [1, 1]} : vector<16x32xf32> to vector<8x16xf32>
    %258 = vector.extract_strided_slice %214 {offsets = [8, 0], sizes = [8, 16], strides = [1, 1]} : vector<16x32xf32> to vector<8x16xf32>
    %259 = tpu.transpose %257, [1, 0] : vector<8x16xf32> -> vector<16x8xf32>
    %cst_101 = arith.constant dense<0.000000e+00> : vector<8x8xf32>
    %260 = tpu.matmul %256, %259, %cst_101 {dimension_numbers = #tpu.dot_dimension_numbers<[1], [0], [0], [1], [0, 0, 1, 1], [], []>} : vector<8x16xf32>, vector<16x8xf32>, vector<8x8xf32> -> vector<8x8xf32>
    %cst_102 = arith.constant 2.500000e-01 : f32
    %261 = vector.broadcast %cst_102 : f32 to vector<8x8xf32>
    %262 = arith.mulf %260, %261 : vector<8x8xf32>
    %263 = vector.broadcast %255 : vector<1x8xf32> to vector<8x8xf32>
    %264 = arith.addf %262, %263 : vector<8x8xf32>
    %cst_103 = arith.constant dense<0xFF800000> : vector<8xf32>
    %265 = vector.multi_reduction <maximumf>, %264, %cst_103 [1] : vector<8x8xf32> to vector<8xf32>
    %266 = vector.shape_cast %265 : vector<8xf32> to vector<8x1xf32>
    %267 = vector.broadcast %266 : vector<8x1xf32> to vector<8x8xf32>
    %268 = arith.subf %264, %267 : vector<8x8xf32>
    %269 = math.exp %268 : vector<8x8xf32>
    %cst_104 = arith.constant dense<0.000000e+00> : vector<8xf32>
    %270 = vector.multi_reduction <add>, %269, %cst_104 [1] : vector<8x8xf32> to vector<8xf32>
    %271 = vector.shape_cast %270 : vector<8xf32> to vector<8x1xf32>
    %272 = vector.broadcast %271 : vector<8x1xf32> to vector<8x8xf32>
    %273 = arith.divf %269, %272 : vector<8x8xf32>
    %cst_105 = arith.constant dense<0.000000e+00> : vector<8x16xf32>
    %274 = tpu.matmul %273, %258, %cst_105 {dimension_numbers = #tpu.dot_dimension_numbers<[1], [0], [0], [1], [0, 0, 1, 1], [], []>} : vector<8x8xf32>, vector<8x16xf32>, vector<8x16xf32> -> vector<8x16xf32>
    %275 = vector.extract_strided_slice %212 {offsets = [8, 16], sizes = [8, 16], strides = [1, 1]} : vector<16x32xf32> to vector<8x16xf32>
    %276 = vector.extract_strided_slice %213 {offsets = [8, 16], sizes = [8, 16], strides = [1, 1]} : vector<16x32xf32> to vector<8x16xf32>
    %277 = vector.extract_strided_slice %214 {offsets = [8, 16], sizes = [8, 16], strides = [1, 1]} : vector<16x32xf32> to vector<8x16xf32>
    %278 = tpu.transpose %276, [1, 0] : vector<8x16xf32> -> vector<16x8xf32>
    %cst_106 = arith.constant dense<0.000000e+00> : vector<8x8xf32>
    %279 = tpu.matmul %275, %278, %cst_106 {dimension_numbers = #tpu.dot_dimension_numbers<[1], [0], [0], [1], [0, 0, 1, 1], [], []>} : vector<8x16xf32>, vector<16x8xf32>, vector<8x8xf32> -> vector<8x8xf32>
    %cst_107 = arith.constant 2.500000e-01 : f32
    %280 = vector.broadcast %cst_107 : f32 to vector<8x8xf32>
    %281 = arith.mulf %279, %280 : vector<8x8xf32>
    %282 = vector.broadcast %255 : vector<1x8xf32> to vector<8x8xf32>
    %283 = arith.addf %281, %282 : vector<8x8xf32>
    %cst_108 = arith.constant dense<0xFF800000> : vector<8xf32>
    %284 = vector.multi_reduction <maximumf>, %283, %cst_108 [1] : vector<8x8xf32> to vector<8xf32>
    %285 = vector.shape_cast %284 : vector<8xf32> to vector<8x1xf32>
    %286 = vector.broadcast %285 : vector<8x1xf32> to vector<8x8xf32>
    %287 = arith.subf %283, %286 : vector<8x8xf32>
    %288 = math.exp %287 : vector<8x8xf32>
    %cst_109 = arith.constant dense<0.000000e+00> : vector<8xf32>
    %289 = vector.multi_reduction <add>, %288, %cst_109 [1] : vector<8x8xf32> to vector<8xf32>
    %290 = vector.shape_cast %289 : vector<8xf32> to vector<8x1xf32>
    %291 = vector.broadcast %290 : vector<8x1xf32> to vector<8x8xf32>
    %292 = arith.divf %288, %291 : vector<8x8xf32>
    %cst_110 = arith.constant dense<0.000000e+00> : vector<8x16xf32>
    %293 = tpu.matmul %292, %277, %cst_110 {dimension_numbers = #tpu.dot_dimension_numbers<[1], [0], [0], [1], [0, 0, 1, 1], [], []>} : vector<8x8xf32>, vector<8x16xf32>, vector<8x16xf32> -> vector<8x16xf32>
    %294 = tpu.concatenate %274, %293 in 1 : vector<8x16xf32>, vector<8x16xf32> -> vector<8x32xf32>
    %295 = tpu.concatenate %254, %294 in 0 : vector<8x32xf32>, vector<8x32xf32> -> vector<16x32xf32>
    %c1_111 = arith.constant 1 : index
    %c0_112 = arith.constant 0 : index
    %c0_113 = arith.constant 0 : index
    %296 = vector.load %arg7[%c1_111, %c0_112, %c0_113] : memref<2x32x32xf32, #tpu.memory_space<vmem>>, vector<1x32x32xf32>
    %297 = vector.shape_cast %296 : vector<1x32x32xf32> to vector<32x32xf32>
    %cst_114 = arith.constant dense<0.000000e+00> : vector<16x32xf32>
    %298 = tpu.matmul %295, %297, %cst_114 {dimension_numbers = #tpu.dot_dimension_numbers<[1], [0], [0], [1], [0, 0, 1, 1], [], []>} : vector<16x32xf32>, vector<32x32xf32>, vector<16x32xf32> -> vector<16x32xf32>
    %c1_115 = arith.constant 1 : index
    %c0_116 = arith.constant 0 : index
    %c0_117 = arith.constant 0 : index
    %299 = vector.load %arg8[%c1_115, %c0_116, %c0_117] : memref<2x1x32xf32, #tpu.memory_space<vmem>>, vector<1x1x32xf32>
    %300 = vector.shape_cast %299 : vector<1x1x32xf32> to vector<1x32xf32>
    %301 = vector.broadcast %300 : vector<1x32xf32> to vector<16x32xf32>
    %302 = arith.addf %298, %301 : vector<16x32xf32>
    %303 = arith.addf %302, %204 : vector<16x32xf32>
    %c1_118 = arith.constant 1 : index
    %c0_119 = arith.constant 0 : index
    %c0_120 = arith.constant 0 : index
    %304 = vector.load %arg9[%c1_118, %c0_119, %c0_120] : memref<2x1x32xf32, #tpu.memory_space<vmem>>, vector<1x1x32xf32>
    %305 = vector.shape_cast %304 : vector<1x1x32xf32> to vector<1x32xf32>
    %c1_121 = arith.constant 1 : index
    %c0_122 = arith.constant 0 : index
    %c0_123 = arith.constant 0 : index
    %306 = vector.load %arg10[%c1_121, %c0_122, %c0_123] : memref<2x1x32xf32, #tpu.memory_space<vmem>>, vector<1x1x32xf32>
    %307 = vector.shape_cast %306 : vector<1x1x32xf32> to vector<1x32xf32>
    %cst_124 = arith.constant dense<0.000000e+00> : vector<16xf32>
    %308 = vector.multi_reduction <add>, %303, %cst_124 [1] : vector<16x32xf32> to vector<16xf32>
    %309 = vector.shape_cast %308 : vector<16xf32> to vector<16x1xf32>
    %cst_125 = arith.constant 3.200000e+01 : f32
    %310 = vector.broadcast %cst_125 : f32 to vector<16x1xf32>
    %311 = arith.divf %309, %310 : vector<16x1xf32>
    %312 = vector.broadcast %311 : vector<16x1xf32> to vector<16x32xf32>
    %313 = arith.subf %303, %312 : vector<16x32xf32>
    %314 = arith.mulf %313, %313 : vector<16x32xf32>
    %cst_126 = arith.constant dense<0.000000e+00> : vector<16xf32>
    %315 = vector.multi_reduction <add>, %314, %cst_126 [1] : vector<16x32xf32> to vector<16xf32>
    %316 = vector.shape_cast %315 : vector<16xf32> to vector<16x1xf32>
    %cst_127 = arith.constant 3.200000e+01 : f32
    %317 = vector.broadcast %cst_127 : f32 to vector<16x1xf32>
    %318 = arith.divf %316, %317 : vector<16x1xf32>
    %319 = vector.broadcast %311 : vector<16x1xf32> to vector<16x32xf32>
    %320 = arith.subf %303, %319 : vector<16x32xf32>
    %cst_128 = arith.constant 9.99999996E-13 : f32
    %321 = vector.broadcast %cst_128 : f32 to vector<16x1xf32>
    %322 = arith.addf %318, %321 : vector<16x1xf32>
    %323 = math.rsqrt %322 : vector<16x1xf32>
    %324 = vector.broadcast %323 : vector<16x1xf32> to vector<16x32xf32>
    %325 = arith.mulf %320, %324 : vector<16x32xf32>
    %326 = vector.broadcast %305 : vector<1x32xf32> to vector<16x32xf32>
    %327 = arith.mulf %325, %326 : vector<16x32xf32>
    %328 = vector.broadcast %307 : vector<1x32xf32> to vector<16x32xf32>
    %329 = arith.addf %327, %328 : vector<16x32xf32>
    %c1_129 = arith.constant 1 : index
    %c0_130 = arith.constant 0 : index
    %c0_131 = arith.constant 0 : index
    %330 = vector.load %arg11[%c1_129, %c0_130, %c0_131] : memref<2x32x64xf32, #tpu.memory_space<vmem>>, vector<1x32x64xf32>
    %331 = vector.shape_cast %330 : vector<1x32x64xf32> to vector<32x64xf32>
    %cst_132 = arith.constant dense<0.000000e+00> : vector<16x64xf32>
    %332 = tpu.matmul %329, %331, %cst_132 {dimension_numbers = #tpu.dot_dimension_numbers<[1], [0], [0], [1], [0, 0, 1, 1], [], []>} : vector<16x32xf32>, vector<32x64xf32>, vector<16x64xf32> -> vector<16x64xf32>
    %c1_133 = arith.constant 1 : index
    %c0_134 = arith.constant 0 : index
    %c0_135 = arith.constant 0 : index
    %333 = vector.load %arg12[%c1_133, %c0_134, %c0_135] : memref<2x1x64xf32, #tpu.memory_space<vmem>>, vector<1x1x64xf32>
    %334 = vector.shape_cast %333 : vector<1x1x64xf32> to vector<1x64xf32>
    %335 = vector.broadcast %334 : vector<1x64xf32> to vector<16x64xf32>
    %336 = arith.addf %332, %335 : vector<16x64xf32>
    %cst_136 = arith.constant 5.000000e-01 : f32
    %337 = vector.broadcast %cst_136 : f32 to vector<16x64xf32>
    %338 = arith.mulf %337, %336 : vector<16x64xf32>
    %cst_137 = arith.constant 4.471500e-02 : f32
    %339 = vector.broadcast %cst_137 : f32 to vector<16x64xf32>
    %340 = arith.mulf %339, %336 : vector<16x64xf32>
    %341 = arith.mulf %340, %336 : vector<16x64xf32>
    %342 = arith.mulf %341, %336 : vector<16x64xf32>
    %343 = arith.addf %336, %342 : vector<16x64xf32>
    %cst_138 = arith.constant 0.797884583 : f32
    %344 = vector.broadcast %cst_138 : f32 to vector<16x64xf32>
    %345 = arith.mulf %344, %343 : vector<16x64xf32>
    %346 = math.tanh %345 : vector<16x64xf32>
    %cst_139 = arith.constant 1.000000e+00 : f32
    %347 = vector.broadcast %cst_139 : f32 to vector<16x64xf32>
    %348 = arith.addf %347, %346 : vector<16x64xf32>
    %349 = arith.mulf %338, %348 : vector<16x64xf32>
    %c1_140 = arith.constant 1 : index
    %c0_141 = arith.constant 0 : index
    %c0_142 = arith.constant 0 : index
    %350 = vector.load %arg13[%c1_140, %c0_141, %c0_142] : memref<2x64x32xf32, #tpu.memory_space<vmem>>, vector<1x64x32xf32>
    %351 = vector.shape_cast %350 : vector<1x64x32xf32> to vector<64x32xf32>
    %cst_143 = arith.constant dense<0.000000e+00> : vector<16x32xf32>
    %352 = tpu.matmul %349, %351, %cst_143 {dimension_numbers = #tpu.dot_dimension_numbers<[1], [0], [0], [1], [0, 0, 1, 1], [], []>} : vector<16x64xf32>, vector<64x32xf32>, vector<16x32xf32> -> vector<16x32xf32>
    %c1_144 = arith.constant 1 : index
    %c0_145 = arith.constant 0 : index
    %c0_146 = arith.constant 0 : index
    %353 = vector.load %arg14[%c1_144, %c0_145, %c0_146] : memref<2x1x32xf32, #tpu.memory_space<vmem>>, vector<1x1x32xf32>
    %354 = vector.shape_cast %353 : vector<1x1x32xf32> to vector<1x32xf32>
    %355 = vector.broadcast %354 : vector<1x32xf32> to vector<16x32xf32>
    %356 = arith.addf %352, %355 : vector<16x32xf32>
    %357 = arith.addf %356, %329 : vector<16x32xf32>
    %c1_147 = arith.constant 1 : index
    %c0_148 = arith.constant 0 : index
    %c0_149 = arith.constant 0 : index
    %358 = vector.load %arg15[%c1_147, %c0_148, %c0_149] : memref<2x1x32xf32, #tpu.memory_space<vmem>>, vector<1x1x32xf32>
    %359 = vector.shape_cast %358 : vector<1x1x32xf32> to vector<1x32xf32>
    %c1_150 = arith.constant 1 : index
    %c0_151 = arith.constant 0 : index
    %c0_152 = arith.constant 0 : index
    %360 = vector.load %arg16[%c1_150, %c0_151, %c0_152] : memref<2x1x32xf32, #tpu.memory_space<vmem>>, vector<1x1x32xf32>
    %361 = vector.shape_cast %360 : vector<1x1x32xf32> to vector<1x32xf32>
    %cst_153 = arith.constant dense<0.000000e+00> : vector<16xf32>
    %362 = vector.multi_reduction <add>, %357, %cst_153 [1] : vector<16x32xf32> to vector<16xf32>
    %363 = vector.shape_cast %362 : vector<16xf32> to vector<16x1xf32>
    %cst_154 = arith.constant 3.200000e+01 : f32
    %364 = vector.broadcast %cst_154 : f32 to vector<16x1xf32>
    %365 = arith.divf %363, %364 : vector<16x1xf32>
    %366 = vector.broadcast %365 : vector<16x1xf32> to vector<16x32xf32>
    %367 = arith.subf %357, %366 : vector<16x32xf32>
    %368 = arith.mulf %367, %367 : vector<16x32xf32>
    %cst_155 = arith.constant dense<0.000000e+00> : vector<16xf32>
    %369 = vector.multi_reduction <add>, %368, %cst_155 [1] : vector<16x32xf32> to vector<16xf32>
    %370 = vector.shape_cast %369 : vector<16xf32> to vector<16x1xf32>
    %cst_156 = arith.constant 3.200000e+01 : f32
    %371 = vector.broadcast %cst_156 : f32 to vector<16x1xf32>
    %372 = arith.divf %370, %371 : vector<16x1xf32>
    %373 = vector.broadcast %365 : vector<16x1xf32> to vector<16x32xf32>
    %374 = arith.subf %357, %373 : vector<16x32xf32>
    %cst_157 = arith.constant 9.99999996E-13 : f32
    %375 = vector.broadcast %cst_157 : f32 to vector<16x1xf32>
    %376 = arith.addf %372, %375 : vector<16x1xf32>
    %377 = math.rsqrt %376 : vector<16x1xf32>
    %378 = vector.broadcast %377 : vector<16x1xf32> to vector<16x32xf32>
    %379 = arith.mulf %374, %378 : vector<16x32xf32>
    %380 = vector.broadcast %359 : vector<1x32xf32> to vector<16x32xf32>
    %381 = arith.mulf %379, %380 : vector<16x32xf32>
    %382 = vector.broadcast %361 : vector<1x32xf32> to vector<16x32xf32>
    %383 = arith.addf %381, %382 : vector<16x32xf32>
    %384 = vector.extract_strided_slice %383 {offsets = [0, 0], sizes = [1, 32], strides = [1, 1]} : vector<16x32xf32> to vector<1x32xf32>
    %385 = vector.extract_strided_slice %383 {offsets = [8, 0], sizes = [1, 32], strides = [1, 1]} : vector<16x32xf32> to vector<1x32xf32>
    %386 = tpu.concatenate %384, %385 in 0 : vector<1x32xf32>, vector<1x32xf32> -> vector<2x32xf32>
    %c0_158 = arith.constant 0 : index
    %c0_159 = arith.constant 0 : index
    %387 = vector.load %arg17[%c0_158, %c0_159] : memref<32x32xf32, #tpu.memory_space<vmem>>, vector<32x32xf32>
    %cst_160 = arith.constant dense<0.000000e+00> : vector<2x32xf32>
    %388 = tpu.matmul %386, %387, %cst_160 {dimension_numbers = #tpu.dot_dimension_numbers<[1], [0], [0], [1], [0, 0, 1, 1], [], []>} : vector<2x32xf32>, vector<32x32xf32>, vector<2x32xf32> -> vector<2x32xf32>
    %c0_161 = arith.constant 0 : index
    %c0_162 = arith.constant 0 : index
    %389 = vector.load %arg18[%c0_161, %c0_162] : memref<1x32xf32, #tpu.memory_space<vmem>>, vector<1x32xf32>
    %390 = vector.broadcast %389 : vector<1x32xf32> to vector<2x32xf32>
    %391 = arith.addf %388, %390 : vector<2x32xf32>
    %392 = math.tanh %391 : vector<2x32xf32>
    %c0_163 = arith.constant 0 : index
    %c0_164 = arith.constant 0 : index
    %393 = vector.load %arg19[%c0_163, %c0_164] : memref<32x128xf32, #tpu.memory_space<vmem>>, vector<32x128xf32>
    %cst_165 = arith.constant dense<0.000000e+00> : vector<2x128xf32>
    %394 = tpu.matmul %392, %393, %cst_165 {dimension_numbers = #tpu.dot_dimension_numbers<[1], [0], [0], [1], [0, 0, 1, 1], [], []>} : vector<2x32xf32>, vector<32x128xf32>, vector<2x128xf32> -> vector<2x128xf32>
    %c0_166 = arith.constant 0 : index
    %c0_167 = arith.constant 0 : index
    %395 = vector.load %arg20[%c0_166, %c0_167] : memref<1x128xf32, #tpu.memory_space<vmem>>, vector<1x128xf32>
    %396 = vector.broadcast %395 : vector<1x128xf32> to vector<2x128xf32>
    %397 = arith.addf %394, %396 : vector<2x128xf32>
    %c0_168 = arith.constant 0 : index
    %c0_169 = arith.constant 0 : index
    %398 = vector.load %arg21[%c0_168, %c0_169] : memref<2x128xf32, #tpu.memory_space<vmem>>, vector<2x128xf32>
    tpu.vector_store %arg21[%c0_168, %c0_169], %397 {strides = array<i32>} : memref<2x128xf32, #tpu.memory_space<vmem>>, vector<2x128xf32>,
    return
  }
  func.func @transform_0(%arg0: i32) -> (i32, i32) {
    %c0_i32 = arith.constant 0 : i32
    %c0_i32_0 = arith.constant 0 : i32
    %c0_i32_1 = arith.constant 0 : i32
    return %c0_i32, %c0_i32_0 : i32, i32
  }
  func.func @transform_1(%arg0: i32) -> (i32, i32) {
    %c0_i32 = arith.constant 0 : i32
    %c0_i32_0 = arith.constant 0 : i32
    %c0_i32_1 = arith.constant 0 : i32
    return %c0_i32, %c0_i32_0 : i32, i32
  }
  func.func @transform_2(%arg0: i32) -> (i32, i32) {
    %c0_i32 = arith.constant 0 : i32
    %c0_i32_0 = arith.constant 0 : i32
    %c0_i32_1 = arith.constant 0 : i32
    return %c0_i32, %c0_i32_0 : i32, i32
  }
  func.func @transform_3(%arg0: i32) -> (i32, i32) {
    %c0_i32 = arith.constant 0 : i32
    %c0_i32_0 = arith.constant 0 : i32
    %c0_i32_1 = arith.constant 0 : i32
    return %c0_i32, %c0_i32_0 : i32, i32
  }
  func.func @transform_4(%arg0: i32) -> (i32, i32, i32) {
    %c0_i32 = arith.constant 0 : i32
    %c0_i32_0 = arith.constant 0 : i32
    %c0_i32_1 = arith.constant 0 : i32
    %c0_i32_2 = arith.constant 0 : i32
    return %c0_i32, %c0_i32_0, %c0_i32_1 : i32, i32, i32
  }
  func.func @transform_5(%arg0: i32) -> (i32, i32, i32) {
    %c0_i32 = arith.constant 0 : i32
    %c0_i32_0 = arith.constant 0 : i32
    %c0_i32_1 = arith.constant 0 : i32
    %c0_i32_2 = arith.constant 0 : i32
    return %c0_i32, %c0_i32_0, %c0_i32_1 : i32, i32, i32
  }
  func.func @transform_6(%arg0: i32) -> (i32, i32, i32) {
    %c0_i32 = arith.constant 0 : i32
    %c0_i32_0 = arith.constant 0 : i32
    %c0_i32_1 = arith.constant 0 : i32
    %c0_i32_2 = arith.constant 0 : i32
    return %c0_i32, %c0_i32_0, %c0_i32_1 : i32, i32, i32
  }
  func.func @transform_7(%arg0: i32) -> (i32, i32, i32) {
    %c0_i32 = arith.constant 0 : i32
    %c0_i32_0 = arith.constant 0 : i32
    %c0_i32_1 = arith.constant 0 : i32
    %c0_i32_2 = arith.constant 0 : i32
    return %c0_i32, %c0_i32_0, %c0_i32_1 : i32, i32, i32
  }
  func.func @transform_8(%arg0: i32) -> (i32, i32, i32) {
    %c0_i32 = arith.constant 0 : i32
    %c0_i32_0 = arith.constant 0 : i32
    %c0_i32_1 = arith.constant 0 : i32
    %c0_i32_2 = arith.constant 0 : i32
    return %c0_i32, %c0_i32_0, %c0_i32_1 : i32, i32, i32
  }
  func.func @transform_9(%arg0: i32) -> (i32, i32, i32) {
    %c0_i32 = arith.constant 0 : i32
    %c0_i32_0 = arith.constant 0 : i32
    %c0_i32_1 = arith.constant 0 : i32
    %c0_i32_2 = arith.constant 0 : i32
    return %c0_i32, %c0_i32_0, %c0_i32_1 : i32, i32, i32
  }
  func.func @transform_10(%arg0: i32) -> (i32, i32, i32) {
    %c0_i32 = arith.constant 0 : i32
    %c0_i32_0 = arith.constant 0 : i32
    %c0_i32_1 = arith.constant 0 : i32
    %c0_i32_2 = arith.constant 0 : i32
    return %c0_i32, %c0_i32_0, %c0_i32_1 : i32, i32, i32
  }
  func.func @transform_11(%arg0: i32) -> (i32, i32, i32) {
    %c0_i32 = arith.constant 0 : i32
    %c0_i32_0 = arith.constant 0 : i32
    %c0_i32_1 = arith.constant 0 : i32
    %c0_i32_2 = arith.constant 0 : i32
    return %c0_i32, %c0_i32_0, %c0_i32_1 : i32, i32, i32
  }
  func.func @transform_12(%arg0: i32) -> (i32, i32, i32) {
    %c0_i32 = arith.constant 0 : i32
    %c0_i32_0 = arith.constant 0 : i32
    %c0_i32_1 = arith.constant 0 : i32
    %c0_i32_2 = arith.constant 0 : i32
    return %c0_i32, %c0_i32_0, %c0_i32_1 : i32, i32, i32
  }
  func.func @transform_13(%arg0: i32) -> (i32, i32, i32) {
    %c0_i32 = arith.constant 0 : i32
    %c0_i32_0 = arith.constant 0 : i32
    %c0_i32_1 = arith.constant 0 : i32
    %c0_i32_2 = arith.constant 0 : i32
    return %c0_i32, %c0_i32_0, %c0_i32_1 : i32, i32, i32
  }
  func.func @transform_14(%arg0: i32) -> (i32, i32, i32) {
    %c0_i32 = arith.constant 0 : i32
    %c0_i32_0 = arith.constant 0 : i32
    %c0_i32_1 = arith.constant 0 : i32
    %c0_i32_2 = arith.constant 0 : i32
    return %c0_i32, %c0_i32_0, %c0_i32_1 : i32, i32, i32
  }
  func.func @transform_15(%arg0: i32) -> (i32, i32, i32) {
    %c0_i32 = arith.constant 0 : i32
    %c0_i32_0 = arith.constant 0 : i32
    %c0_i32_1 = arith.constant 0 : i32
    %c0_i32_2 = arith.constant 0 : i32
    return %c0_i32, %c0_i32_0, %c0_i32_1 : i32, i32, i32
  }
  func.func @transform_16(%arg0: i32) -> (i32, i32) {
    %c0_i32 = arith.constant 0 : i32
    %c0_i32_0 = arith.constant 0 : i32
    %c0_i32_1 = arith.constant 0 : i32
    return %c0_i32, %c0_i32_0 : i32, i32
  }
  func.func @transform_17(%arg0: i32) -> (i32, i32) {
    %c0_i32 = arith.constant 0 : i32
    %c0_i32_0 = arith.constant 0 : i32
    %c0_i32_1 = arith.constant 0 : i32
    return %c0_i32, %c0_i32_0 : i32, i32
  }
  func.func @transform_18(%arg0: i32) -> (i32, i32) {
    %c0_i32 = arith.constant 0 : i32
    %c0_i32_0 = arith.constant 0 : i32
    %c0_i32_1 = arith.constant 0 : i32
    return %c0_i32, %c0_i32_0 : i32, i32
  }
  func.func @transform_19(%arg0: i32) -> (i32, i32) {
    %c0_i32 = arith.constant 0 : i32
    %c0_i32_0 = arith.constant 0 : i32
    %c0_i32_1 = arith.constant 0 : i32
    return %c0_i32, %c0_i32_0 : i32, i32
  }
  func.func @transform_20(%arg0: i32) -> (i32, i32) {
    %c0_i32 = arith.constant 0 : i32
    %c0_i32_0 = arith.constant 0 : i32
    %c0_i32_1 = arith.constant 0 : i32
    return %c0_i32, %c0_i32_0 : i32, i32
  }
}

</mosaic_0001>

<bundles_post_ra>
// kernel: tpu_custom_call.1
= control target key start
LH: loop header
LB: loop body
LE: loop exit
PB: predicated region body
PF: predicated region fallthrough
CT: control target
= control target key end

     0   :  { %s4410_s0 = inlined_call_operand.hbm [shape: f32[16,32], index: 0, kind: input, shape index: {}]   ;;  %s4411_s1 = inlined_call_operand.hbm [shape: f32[2,8], index: 1, kind: input, shape index: {}]   ;;  %s4412_s2 = inlined_call_operand.hbm [shape: f32[1,32], index: 2, kind: input, shape index: {}]   ;;  %s4413_s3 = inlined_call_operand.hbm [shape: f32[1,32], index: 3, kind: input, shape index: {}]   ;;  %s4414_s4 = inlined_call_operand.vmem [shape: f32[2,32,96], index: 4, kind: input, shape index: {}]   ;;  %s4415_s5 = inlined_call_operand.hbm [shape: f32[2,1,96], index: 5, kind: input, shape index: {}]   ;;  %s4416_s6 = inlined_call_operand.vmem [shape: f32[2,32,32], index: 6, kind: input, shape index: {}]   ;;  %s4417_s7 = inlined_call_operand.hbm [shape: f32[2,1,32], index: 7, kind: input, shape index: {}]   ;;  %s4418_s8 = inlined_call_operand.hbm [shape: f32[2,1,32], index: 8, kind: input, shape index: {}]   ;;  %s4419_s9 = inlined_call_operand.hbm [shape: f32[2,1,32], index: 9, kind: input, shape index: {}]   ;;  %s4420_s10 = inlined_call_operand.vmem [shape: f32[2,32,64], index: 10, kind: input, shape index: {}]   ;;  %s4421_s11 = inlined_call_operand.hbm [shape: f32[2,1,64], index: 11, kind: input, shape index: {}]   ;;  %s4422_s12 = inlined_call_operand.vmem [shape: f32[2,64,32], index: 12, kind: input, shape index: {}]   ;;  %s4423_s13 = inlined_call_operand.hbm [shape: f32[2,1,32], index: 13, kind: input, shape index: {}]   ;;  %s4424_s14 = inlined_call_operand.hbm [shape: f32[2,1,32], index: 14, kind: input, shape index: {}]   ;;  %s4425_s15 = inlined_call_operand.hbm [shape: f32[2,1,32], index: 15, kind: input, shape index: {}]   ;;  %s4426_s16 = inlined_call_operand.vmem [shape: f32[32,32], index: 16, kind: input, shape index: {}]   ;;  %s4427_s17 = inlined_call_operand.hbm [shape: f32[1,32], index: 17, kind: input, shape index: {}]   ;;  %s4428_s18 = inlined_call_operand.vmem [shape: f32[32,128], index: 18, kind: input, shape index: {}]   ;;  %s4429_s19 = inlined_call_operand.vmem [shape: f32[1,128], index: 19, kind: input, shape index: {}]   ;;  %s4430_s20 = inlined_call_operand.hbm [shape: f32[2,128], index: 20, kind: output, shape index: {}]  }
   0x1   :  { %4438 = sst [smem:[#allocation32_spill]] %s4410_s0 }
   0x2   :  { %4439 = sst [smem:[#allocation33_spill]] %s4411_s1 }
   0x3   :  { %4440 = sst [smem:[#allocation34_spill]] %s4412_s2 }
   0x4   :  { %4441 = sst [smem:[#allocation35_spill]] %s4413_s3 }
   0x5   :  { %4442 = sst [smem:[#allocation36_spill]] %s4414_s4 }
   0x6   :  { %25 = vsyncpa [#allocation3], 0 }
   0x7   :  { %26 = vsyncpa [#allocation6], 0 }
   0x8   :  { %27 = vsyncpa [#allocation9], 0 }
   0x9   :  { %28 = vsyncpa [#allocation12], 0 }
   0xa   :  { %29 = vsyncpa [#allocation15], 0 }
   0xb   :  { %30 = vsyncpa [#allocation18], 0 }
   0xc   :  { %31 = vsyncpa [#allocation21], 0 }
   0xd   :  { %32 = vsyncpa [#allocation4], 0  ;;  %s3708_s1 = smov [#allocation5]   ;;  %s3709_s23 = smov [#allocation8]  }
   0xe   :  { %s51_s22 = sshll.u32 %s3708_s1, 4  ;;  %s71_s24 = sshll.u32 %s3709_s23, 4  ;;  %s52_s22 = int_to_ptr.vmem [resolvable:$true] %s51_s22  ;;  %s72_s24 = int_to_ptr.vmem [resolvable:$true] %s71_s24 }
   0xf   :  { %s4443_s3 = sld [smem:[#allocation33_spill]] }
  0x15   :  { %s3384_s26 = scalar_lea.hbm %s4443_s3, 32 }
  0x16   :  { %p3385_p0 = scmp.ne.s32.totalorder %s4443_s3, %s3384_s26  ;;  %p3388_p1 = scmp.lt.u32.totalorder %s3384_s26, %s4443_s3 }
  0x18   :  { %p3390_p2 = pnand %p3388_p1, %p3385_p0 }
  0x1a   :  { %3393 = shalt.err (!%p3390_p2)
}
  0x1b   :  { %s3394_s30 = scalar_lea.vmem %s52_s22, 32  ;;  %p3399_p4 = scmp.lt.s32.totalorder %s52_s22, %s52_s22 }
  0x1c   :  { %p3395_p3 = scmp.ne.s32.totalorder %s52_s22, %s3394_s30  ;;  %p3400_p5 = scmp.lt.s32.totalorder %s3394_s30, %s3394_s30 }
  0x1e   :  { %p3401_p6 = por %p3400_p5, %p3399_p4 }
  0x20   :  { %p3402_p7 = pnand %p3401_p6, %p3395_p3 }
  0x22   :  { %3405 = shalt.err (!%p3402_p7)
}
  0x23   :  { %54 = dma.hbm_to_vmem [thread:$0]  %s4443_s3, 32, %s52_s22, [#allocation6]  }
  0x24   :  { %s4444_s2 = sld [smem:[#allocation35_spill]] }
  0x2a   :  { %s3406_s25 = scalar_lea.hbm %s4444_s2, 16 }
  0x2b   :  { %p3407_p8 = scmp.ne.s32.totalorder %s4444_s2, %s3406_s25  ;;  %p3410_p9 = scmp.lt.u32.totalorder %s3406_s25, %s4444_s2 }
  0x2d   :  { %p3412_p10 = pnand %p3410_p9, %p3407_p8 }
  0x2f   :  { %3415 = shalt.err (!%p3412_p10)
}
  0x30   :  { %s3416_s29 = scalar_lea.vmem %s72_s24, 16  ;;  %s3420_s30 = scalar_lea.vmem %s72_s24, 32 }
  0x31   :  { %p3417_p11 = scmp.ne.s32.totalorder %s72_s24, %s3416_s29  ;;  %p3421_p12 = scmp.lt.s32.totalorder %s72_s24, %s72_s24 }
  0x32   :  { %p3422_p13 = scmp.lt.s32.totalorder %s3420_s30, %s3416_s29 }
  0x34   :  { %p3423_p0 = por %p3422_p13, %p3421_p12 }
  0x36   :  { %p3424_p1 = pnand %p3423_p0, %p3417_p11 }
  0x38   :  { %3427 = shalt.err (!%p3424_p1)
}
  0x39   :  { %74 = dma.hbm_to_vmem [thread:$0]  %s4444_s2, 16, %s72_s24, [#allocation9]  }
  0x3a   :  { %s3710_s0 = smov [#allocation11]   ;;  %s3711_s1 = smov [#allocation14]  }
  0x3b   :  { %s96_s21 = sshll.u32 %s3710_s0, 4  ;;  %s120_s23 = sshll.u32 %s3711_s1, 4  ;;  %s97_s21 = int_to_ptr.vmem [resolvable:$true] %s96_s21  ;;  %s3863_s23 = int_to_ptr.vmem [resolvable:$true] %s120_s23 }
  0x3c   :  { %s3428_s28 = scalar_lea.hbm %s4417_s7, 32 }
  0x3d   :  { %p3429_p2 = scmp.ne.s32.totalorder %s4417_s7, %s3428_s28  ;;  %p3432_p3 = scmp.lt.u32.totalorder %s3428_s28, %s4417_s7 }
  0x3f   :  { %p3434_p4 = pnand %p3432_p3, %p3429_p2 }
  0x41   :  { %3437 = shalt.err (!%p3434_p4)
}
  0x42   :  { %s3438_s24 = scalar_lea.vmem %s97_s21, 32  ;;  %p3443_p6 = scmp.lt.s32.totalorder %s97_s21, %s97_s21 }
  0x43   :  { %p3439_p5 = scmp.ne.s32.totalorder %s97_s21, %s3438_s24  ;;  %p3444_p7 = scmp.lt.s32.totalorder %s3438_s24, %s3438_s24 }
  0x45   :  { %p3445_p8 = por %p3444_p7, %p3443_p6 }
  0x47   :  { %p3446_p9 = pnand %p3445_p8, %p3439_p5 }
  0x49   :  { %3449 = shalt.err (!%p3446_p9)
}
  0x4a   :  { %s4436_s2 = smov 16   ;;  %s3713_s22 = smov 1  }
  0x4b   :  { %102 = dma.hbm_to_vmem [thread:$0]  %s4417_s7, 32, %s97_s21, [#allocation12], %s4436_s2, %s4436_s2, %s3713_s22  }
  0x4c   :  { %s3450_s27 = scalar_lea.hbm %s4419_s9, 32 }
  0x4d   :  { %p3451_p10 = scmp.ne.s32.totalorder %s4419_s9, %s3450_s27  ;;  %p3454_p11 = scmp.lt.u32.totalorder %s3450_s27, %s4419_s9 }
  0x4f   :  { %p3456_p12 = pnand %p3454_p11, %p3451_p10 }
  0x51   :  { %3459 = shalt.err (!%p3456_p12)
}
  0x52   :  { %s3460_s30 = scalar_lea.vmem %s3863_s23, 32  ;;  %p3465_p0 = scmp.lt.s32.totalorder %s3863_s23, %s3863_s23 }
  0x53   :  { %p3461_p13 = scmp.ne.s32.totalorder %s3863_s23, %s3460_s30  ;;  %p3466_p1 = scmp.lt.s32.totalorder %s3460_s30, %s3460_s30 }
  0x55   :  { %p3467_p2 = por %p3466_p1, %p3465_p0 }
  0x57   :  { %p3468_p3 = pnand %p3467_p2, %p3461_p13 }
  0x59   :  { %3471 = shalt.err (!%p3468_p3)
}
  0x5a   :  { %126 = dma.hbm_to_vmem [thread:$0]  %s4419_s9, 32, %s3863_s23, [#allocation15], %s4436_s2, %s4436_s2, %s3713_s22  }
  0x5b   :  { %s3714_s24 = smov [#allocation17]   ;;  %s3715_s0 = smov [#allocation20]  }
  0x5c   :  { %s148_s3 = sshll.u32 %s3714_s24, 4  ;;  %s172_s1 = sshll.u32 %s3715_s0, 4  ;;  %s149_s3 = int_to_ptr.vmem [resolvable:$true] %s148_s3  ;;  %s3900_s1 = int_to_ptr.vmem [resolvable:$true] %s172_s1 }
  0x5d   :  { %s3472_s28 = scalar_lea.hbm %s4423_s13, 32 }
  0x5e   :  { %p3473_p4 = scmp.ne.s32.totalorder %s4423_s13, %s3472_s28  ;;  %p3476_p5 = scmp.lt.u32.totalorder %s3472_s28, %s4423_s13 }
  0x60   :  { %p3478_p6 = pnand %p3476_p5, %p3473_p4 }
  0x62   :  { %3481 = shalt.err (!%p3478_p6)
}
  0x63   :  { %s3482_s9 = scalar_lea.vmem %s149_s3, 32  ;;  %p3487_p8 = scmp.lt.s32.totalorder %s149_s3, %s149_s3 }
  0x64   :  { %p3483_p7 = scmp.ne.s32.totalorder %s149_s3, %s3482_s9  ;;  %p3488_p9 = scmp.lt.s32.totalorder %s3482_s9, %s3482_s9 }
  0x66   :  { %p3489_p10 = por %p3488_p9, %p3487_p8 }
  0x68   :  { %p3490_p11 = pnand %p3489_p10, %p3483_p7 }
  0x6a   :  { %3493 = shalt.err (!%p3490_p11)
}
  0x6b   :  { %154 = dma.hbm_to_vmem [thread:$0]  %s4423_s13, 32, %s149_s3, [#allocation18], %s4436_s2, %s4436_s2, %s3713_s22  }
  0x6c   :  { %s3494_s0 = scalar_lea.hbm %s4425_s15, 32 }
  0x6d   :  { %p3495_p12 = scmp.ne.s32.totalorder %s4425_s15, %s3494_s0  ;;  %p3498_p13 = scmp.lt.u32.totalorder %s3494_s0, %s4425_s15 }
  0x6f   :  { %p3500_p0 = pnand %p3498_p13, %p3495_p12 }
  0x71   :  { %3503 = shalt.err (!%p3500_p0)
}
  0x72   :  { %s3504_s4 = scalar_lea.vmem %s3900_s1, 32  ;;  %p3509_p2 = scmp.lt.s32.totalorder %s3900_s1, %s3900_s1 }
  0x73   :  { %p3505_p1 = scmp.ne.s32.totalorder %s3900_s1, %s3504_s4  ;;  %p3510_p3 = scmp.lt.s32.totalorder %s3504_s4, %s3504_s4 }
  0x75   :  { %p3511_p4 = por %p3510_p3, %p3509_p2 }
  0x77   :  { %p3512_p5 = pnand %p3511_p4, %p3505_p1 }
  0x79   :  { %3515 = shalt.err (!%p3512_p5)
}
  0x7a   :  { %178 = dma.hbm_to_vmem [thread:$0]  %s4425_s15, 32, %s3900_s1, [#allocation21], %s4436_s2, %s4436_s2, %s3713_s22  }
  0x7b   :  { %s3716_s29 = smov [#allocation2]   ;;  %s4445_s7 = sld [smem:[#allocation32_spill]] }
  0x7c   :  { %s38_s30 = sshll.u32 %s3716_s29, 4  ;;  %s39_s30 = int_to_ptr.vmem [resolvable:$true] %s38_s30 }
  0x81   :  { %s3516_s21 = scalar_lea.hbm %s4445_s7, 256 }
  0x82   :  { %p3517_p6 = scmp.ne.s32.totalorder %s4445_s7, %s3516_s21  ;;  %p3520_p7 = scmp.lt.u32.totalorder %s3516_s21, %s4445_s7 }
  0x84   :  { %p3522_p8 = pnand %p3520_p7, %p3517_p6 }
  0x86   :  { %3525 = shalt.err (!%p3522_p8)
}
  0x87   :  { %s3526_s28 = scalar_lea.vmem %s39_s30, 256  ;;  %p3531_p10 = scmp.lt.s32.totalorder %s39_s30, %s39_s30 }
  0x88   :  { %p3527_p9 = scmp.ne.s32.totalorder %s39_s30, %s3526_s28  ;;  %p3532_p11 = scmp.lt.s32.totalorder %s3526_s28, %s3526_s28 }
  0x8a   :  { %p3533_p12 = por %p3532_p11, %p3531_p10 }
  0x8c   :  { %p3534_p13 = pnand %p3533_p12, %p3527_p9 }
  0x8e   :  { %3537 = shalt.err (!%p3534_p13)
}
  0x8f   :  { %s3717_s15 = smov 128   ;;  %s3718_s1 = smov 8  }
  0x90   :  { %44 = dma.hbm_to_vmem [thread:$0]  %s4445_s7, 256, %s39_s30, [#allocation3], %s3717_s15, %s3717_s15, %s3718_s1  }
  0x91   :  { %s3719_s13 = smov [#allocation7]   ;;  %s3720_s29 = smov [#allocation10]  }
  0x92   :  { %s61_s3 = sshll.u32 %s3719_s13, 4  ;;  %s82_s9 = sshll.u32 %s3720_s29, 4  ;;  %s62_s3 = int_to_ptr.vmem [resolvable:$true] %s61_s3  ;;  %s83_s9 = int_to_ptr.vmem [resolvable:$true] %s82_s9 }
  0x93   :  { %s4446_s24 = sld [smem:[#allocation34_spill]] }
  0x99   :  { %s3538_s0 = scalar_lea.hbm %s4446_s24, 16 }
  0x9a   :  { %p3539_p0 = scmp.ne.s32.totalorder %s4446_s24, %s3538_s0  ;;  %p3542_p1 = scmp.lt.u32.totalorder %s3538_s0, %s4446_s24 }
  0x9c   :  { %p3544_p2 = pnand %p3542_p1, %p3539_p0 }
  0x9e   :  { %3547 = shalt.err (!%p3544_p2)
}
  0x9f   :  { %s3548_s30 = scalar_lea.vmem %s62_s3, 16  ;;  %s3552_s7 = scalar_lea.vmem %s62_s3, 32 }
  0xa0   :  { %p3549_p3 = scmp.ne.s32.totalorder %s62_s3, %s3548_s30  ;;  %p3553_p4 = scmp.lt.s32.totalorder %s62_s3, %s62_s3 }
  0xa1   :  { %p3554_p5 = scmp.lt.s32.totalorder %s3552_s7, %s3548_s30 }
  0xa3   :  { %p3555_p6 = por %p3554_p5, %p3553_p4 }
  0xa5   :  { %p3556_p7 = pnand %p3555_p6, %p3549_p3 }
  0xa7   :  { %3559 = shalt.err (!%p3556_p7)
}
  0xa8   :  { %64 = dma.hbm_to_vmem [thread:$0]  %s4446_s24, 16, %s62_s3, [#allocation6]  }
  0xa9   :  { %s3560_s2 = scalar_lea.hbm %s4415_s5, 32 }
  0xaa   :  { %p3561_p8 = scmp.ne.s32.totalorder %s4415_s5, %s3560_s2  ;;  %p3564_p9 = scmp.lt.u32.totalorder %s3560_s2, %s4415_s5 }
  0xac   :  { %p3566_p10 = pnand %p3564_p9, %p3561_p8 }
  0xae   :  { %3569 = shalt.err (!%p3566_p10)
}
  0xaf   :  { %s3570_s0 = scalar_lea.vmem %s83_s9, 32  ;;  %p3575_p12 = scmp.lt.s32.totalorder %s83_s9, %s83_s9 }
  0xb0   :  { %p3571_p11 = scmp.ne.s32.totalorder %s83_s9, %s3570_s0  ;;  %p3576_p13 = scmp.lt.s32.totalorder %s3570_s0, %s3570_s0 }
  0xb2   :  { %p3577_p0 = por %p3576_p13, %p3575_p12 }
  0xb4   :  { %p3578_p1 = pnand %p3577_p0, %p3571_p11 }
  0xb6   :  { %3581 = shalt.err (!%p3578_p1)
}
  0xb7   :  { %s4447_s3 = smov 16   ;;  %s3721_s27 = smov [#allocation13]  }
  0xb8   :  { %88 = dma.hbm_to_vmem [thread:$0]  %s4415_s5, 32, %s83_s9, [#allocation9], %s4447_s3, %s4447_s3, %s3713_s22  }
  0xb9   :  { %s108_s28 = sshll.u32 %s3721_s27, 4  ;;  %s3722_s30 = smov [#allocation16]   ;;  %s109_s28 = int_to_ptr.vmem [resolvable:$true] %s108_s28 }
  0xba   :  { %s134_s7 = sshll.u32 %s3722_s30, 4  ;;  %s3582_s26 = scalar_lea.hbm %s4418_s8, 32  ;;  %s135_s7 = int_to_ptr.vmem [resolvable:$true] %s134_s7 }
  0xbb   :  { %p3583_p2 = scmp.ne.s32.totalorder %s4418_s8, %s3582_s26  ;;  %p3586_p3 = scmp.lt.u32.totalorder %s3582_s26, %s4418_s8 }
  0xbd   :  { %p3588_p4 = pnand %p3586_p3, %p3583_p2 }
  0xbf   :  { %3591 = shalt.err (!%p3588_p4)
}
  0xc0   :  { %s3592_s5 = scalar_lea.vmem %s109_s28, 32  ;;  %p3597_p6 = scmp.lt.s32.totalorder %s109_s28, %s109_s28 }
  0xc1   :  { %p3593_p5 = scmp.ne.s32.totalorder %s109_s28, %s3592_s5  ;;  %p3598_p7 = scmp.lt.s32.totalorder %s3592_s5, %s3592_s5 }
  0xc3   :  { %p3599_p8 = por %p3598_p7, %p3597_p6 }
  0xc5   :  { %p3600_p9 = pnand %p3599_p8, %p3593_p5 }
  0xc7   :  { %3603 = shalt.err (!%p3600_p9)
}
  0xc8   :  { %114 = dma.hbm_to_vmem [thread:$0]  %s4418_s8, 32, %s109_s28, [#allocation12], %s4447_s3, %s4447_s3, %s3713_s22  }
  0xc9   :  { %s3604_s24 = scalar_lea.hbm %s4421_s11, 32 }
  0xca   :  { %p3605_p10 = scmp.ne.s32.totalorder %s4421_s11, %s3604_s24  ;;  %p3608_p11 = scmp.lt.u32.totalorder %s3604_s24, %s4421_s11 }
  0xcc   :  { %p3610_p12 = pnand %p3608_p11, %p3605_p10 }
  0xce   :  { %3613 = shalt.err (!%p3610_p12)
}
  0xcf   :  { %s3614_s1 = scalar_lea.vmem %s135_s7, 32  ;;  %p3619_p0 = scmp.lt.s32.totalorder %s135_s7, %s135_s7 }
  0xd0   :  { %p3615_p13 = scmp.ne.s32.totalorder %s135_s7, %s3614_s1  ;;  %p3620_p1 = scmp.lt.s32.totalorder %s3614_s1, %s3614_s1 }
  0xd2   :  { %p3621_p2 = por %p3620_p1, %p3619_p0 }
  0xd4   :  { %p3622_p3 = pnand %p3621_p2, %p3615_p13 }
  0xd6   :  { %3625 = shalt.err (!%p3622_p3)
}
  0xd7   :  { %140 = dma.hbm_to_vmem [thread:$0]  %s4421_s11, 32, %s135_s7, [#allocation15], %s4447_s3, %s4447_s3, %s3713_s22  }
  0xd8   :  { %s3723_s26 = smov [#allocation19]   ;;  %s3724_s2 = smov [#allocation22]  }
  0xd9   :  { %s160_s4 = sshll.u32 %s3723_s26, 4  ;;  %s187_s13 = sshll.u32 %s3724_s2, 4  ;;  %s161_s4 = int_to_ptr.vmem [resolvable:$true] %s160_s4  ;;  %s188_s13 = int_to_ptr.vmem [resolvable:$true] %s187_s13 }
  0xda   :  { %s3626_s9 = scalar_lea.hbm %s4424_s14, 32 }
  0xdb   :  { %p3627_p4 = scmp.ne.s32.totalorder %s4424_s14, %s3626_s9  ;;  %p3630_p5 = scmp.lt.u32.totalorder %s3626_s9, %s4424_s14 }
  0xdd   :  { %p3632_p6 = pnand %p3630_p5, %p3627_p4 }
  0xdf   :  { %3635 = shalt.err (!%p3632_p6)
}
  0xe0   :  { %s3636_s11 = scalar_lea.vmem %s161_s4, 32  ;;  %p3641_p8 = scmp.lt.s32.totalorder %s161_s4, %s161_s4 }
  0xe1   :  { %p3637_p7 = scmp.ne.s32.totalorder %s161_s4, %s3636_s11  ;;  %p3642_p9 = scmp.lt.s32.totalorder %s3636_s11, %s3636_s11 }
  0xe3   :  { %p3643_p10 = por %p3642_p9, %p3641_p8 }
  0xe5   :  { %p3644_p11 = pnand %p3643_p10, %p3637_p7 }
  0xe7   :  { %3647 = shalt.err (!%p3644_p11)
}
  0xe8   :  { %166 = dma.hbm_to_vmem [thread:$0]  %s4424_s14, 32, %s161_s4, [#allocation18], %s4447_s3, %s4447_s3, %s3713_s22  }
  0xe9   :  { %s3648_s15 = scalar_lea.hbm %s4427_s17, 16 }
  0xea   :  { %p3649_p12 = scmp.ne.s32.totalorder %s4427_s17, %s3648_s15  ;;  %p3652_p13 = scmp.lt.u32.totalorder %s3648_s15, %s4427_s17 }
  0xec   :  { %p3654_p0 = pnand %p3652_p13, %p3649_p12 }
  0xee   :  { %3657 = shalt.err (!%p3654_p0)
}
  0xef   :  { %s3658_s2 = scalar_lea.vmem %s188_s13, 16  ;;  %s3662_s29 = scalar_lea.vmem %s188_s13, 32 }
  0xf0   :  { %p3659_p1 = scmp.ne.s32.totalorder %s188_s13, %s3658_s2  ;;  %p3663_p2 = scmp.lt.s32.totalorder %s188_s13, %s188_s13 }
  0xf1   :  { %p3664_p3 = scmp.lt.s32.totalorder %s3662_s29, %s3658_s2 }
  0xf3   :  { %p3665_p4 = por %p3664_p3, %p3663_p2 }
  0xf5   :  { %p3666_p5 = pnand %p3665_p4, %p3659_p1 }
  0xf7   :  { %3669 = shalt.err (!%p3666_p5)
}
  0xf8   :  { %190 = dma.hbm_to_vmem [thread:$0]  %s4427_s17, 16, %s188_s13, [#allocation21]  }
  0xf9   :  { %3692 = dma.done.wait [#allocation3], 256  }
  0xfa   :  { %3693 = vsyncadd [#allocation3], 4294967040 }
  0xfb   :  { %3694 = dma.done.wait [#allocation6], 48  }
  0xfc   :  { %3695 = vsyncadd [#allocation6], 4294967248 }
  0xfd   :  { %3696 = dma.done.wait [#allocation9], 48  }
  0xfe   :  { %3697 = vsyncadd [#allocation9], 4294967248 }
  0xff   :  { %3698 = dma.done.wait [#allocation12], 64  }
 0x100   :  { %3699 = vsyncadd [#allocation12], 4294967232 }
 0x101   :  { %3700 = dma.done.wait [#allocation15], 64  }
 0x102   :  { %3701 = vsyncadd [#allocation15], 4294967232 }
 0x103   :  { %3702 = dma.done.wait [#allocation18], 64  }
 0x104   :  { %3703 = vsyncadd [#allocation18], 4294967232 }
 0x105   :  { %3704 = dma.done.wait [#allocation21], 48  }
 0x106   :  { %3705 = vsyncadd [#allocation21], 4294967248  ;;  %vm238_vm0 = vcmask 261120   ;;  %v234_v0 = vld [vmem:[#allocation2] sm:$0xff]  ;;  %v235_v1 = vld [vmem:[#allocation2 + $0x8] sm:$0xff]  ;;  %s4448_s13 = sld [smem:[#allocation36_spill]]  ;;  %v454_v48 = vlaneseq }
 0x107   :  { %v239_v2 = vsel %vm238_vm0, %v234_v0, 0.0  ;;  %v242_v3 = vsel %vm238_vm0, %v235_v1, 0.0  ;;  %v2818_v27 = vld [vmem:[#allocation7] ss:$0 sm:$0xff]  ;;  %v2819_v29 = vld [vmem:[#allocation8] ss:$0 sm:$0xff] }
 0x108   :  { %240 = vadd.xlane.f32.xlu0 %v239_v2  ;;  %v3725_v36 = vmov 0.0   ;;  %vm3726_vm1 = vmmov 0   ;;  %v2820_v37 = vld [vmem:[#allocation10] ss:$0 sm:$0xff]  ;;  %s3727_s11 = smov 80   ;;  %s3728_s7 = smov 96  }
 0x109   :  { %3009 = vmatprep.subr.mxu1 %v3725_v36  ;;  %3011 = vmatprep.mubr.msk.f32.mxu1 %vm3726_vm1, %v3725_v36  ;;  %s3729_s25 = smov 112   ;;  %vm378_vm2 = vcmask 130048   ;;  %v455_v49 = vshrl.u32 %v454_v48, 7  ;;  %v282_v51 = vld [vmem:[#allocation5] sm:$0x3]  ;;  %vm459_vm3 = vcmask 64512  }
 0x10a   :  { %s3730_s27 = smov 48   ;;  %s3731_s30 = smov 64   ;;  %vm1324_vm4 = vcmask 523264   ;;  %vm2625_vm5 = vcmask 1040384  }
 0x10b   :  { %v456_v50 = vsub.s32 0, %v455_v49  ;;  %v799_v60 = vsub.s32 1, %v455_v49  ;;  %s3733_s8 = smov [#allocation23]  }
 0x10c   :  { %243 = vadd.xlane.f32.xlu0 %v242_v3  ;;  %v283_v14 = vld [vmem:[%s4448_s13] sm:$0xff]  ;;  %v284_v15 = vld [vmem:[%s4448_s13 + $0x8] sm:$0xff]  ;;  %v285_v16 = vld [vmem:[%s4448_s13 + $0x10] sm:$0xff]  ;;  %s2803_s28 = sshll.u32 %s3733_s8, 4  ;;  %s2804_s28 = int_to_ptr.vmem [resolvable:$true] %s2803_s28 }
 0x10d   :  { %v3204_v17 = vpack.c.bf16 %v284_v15, %v283_v14  ;;  %v286_v18 = vld [vmem:[%s4448_s13 + $0x18] sm:$0xff]  ;;  %v4098_v52 = vrot.slane %v282_v51, %v456_v50  ;;  %v1061_v50 = vld [vmem:[%s4416_s6] sm:$0xff]  ;;  %p3675_p7 = scmp.lt.s32.totalorder %s2804_s28, %s2804_s28 }
 0x10e   :  { %v3208_v19 = vpack.c.bf16 %v286_v18, %v285_v16 }
 0x10f   :  { %3205 = vmatprep.subr.bf16.mxu0 %v3204_v17 }
 0x110   :  { %3207 = vmatpush3.bf16.msra.mxu0 %v3204_v17 }
 0x111   :  { %3209 = vmatprep.subr.bf16.mxu0 %v3208_v19 }
 0x114   :  { %3211 = vmatpush3.bf16.msra.mxu0 %v3208_v19 }
 0x115   :  { %3019 = vmatprep.subr.mxu0 %v3725_v36 }
 0x195   :  { %v241_v4 = vpop.xlane.xlu0 %240 }
 0x196   :  { %v246_v5 = vmul.f32 0.03125, %v241_v4 }
 0x198   :  { %v248_v6 = vsub.f32 %v234_v0, %v246_v5  ;;  %v4104_v0 = vrot.slane %v282_v51, %v799_v60  ;;  %v1062_v51 = vld [vmem:[%s4416_s6 + $0x8] sm:$0xff] }
 0x199   :  { %v244_v7 = vpop.xlane.xlu0 %243 }
 0x19a   :  { %v247_v8 = vmul.f32 0.03125, %v244_v7  ;;  %v250_v9 = vmul.f32 %v248_v6, %v248_v6 }
 0x19c   :  { %v249_v10 = vsub.f32 %v235_v1, %v247_v8  ;;  %v252_v11 = vsel %vm238_vm0, %v250_v9, 0.0 }
 0x19d   :  { %253 = vadd.xlane.f32.xlu1 %v252_v11 }
 0x19e   :  { %v251_v12 = vmul.f32 %v249_v10, %v249_v10 }
 0x1a0   :  { %v255_v13 = vsel %vm238_vm0, %v251_v12, 0.0 }
 0x1a1   :  { %256 = vadd.xlane.f32.xlu1 %v255_v13 }
 0x22a   :  { %v254_v20 = vpop.xlane.xlu1 %253 }
 0x22b   :  { %v258_v21 = vmul.f32 0.03125, %v254_v20 }
 0x22d   :  { %v260_v22 = vadd.f32 1e-12, %v258_v21 }
 0x22e   :  { %v257_v23 = vpop.xlane.xlu1 %256 }
 0x22f   :  { %3322 = vrsqrt.f32 %v260_v22  ;;  %v259_v24 = vmul.f32 0.03125, %v257_v23 }
 0x231   :  { %v261_v25 = vadd.f32 1e-12, %v259_v24 }
 0x233   :  { %3324 = vrsqrt.f32 %v261_v25 }
 0x239   :  { %v3323_v26 = vpop.eup %3322 }
 0x23a   :  { %v264_v28 = vmul.f32 %v3323_v26, %v248_v6 }
 0x23c   :  { %v272_v30 = vmul.f32 %v2818_v27, %v264_v28 }
 0x23d   :  { %v3325_v31 = vpop.eup %3324 }
 0x23e   :  { %v265_v32 = vmul.f32 %v3325_v31, %v249_v10  ;;  %v4049_v33 = vadd.f32 %v2819_v29, %v272_v30 }
 0x240   :  { %v273_v34 = vmul.f32 %v2818_v27, %v265_v32  ;;  %3006 = vmatprep.mubr.msk.f32.mxu0 %vm238_vm0, %v4049_v33 }
 0x242   :  { %v4053_v35 = vadd.f32 %v2819_v29, %v273_v34 }
 0x244   :  { %3007 = vmatmul.mubr.msk.f32.vlgmr.msra.gmra.mrb[0].mxu0 %vm238_vm0, %v4053_v35 }
 0x245   :  { %3021 = vmatprep.mubr.msk.f32.mxu0 %vm3726_vm1, %v3725_v36 }
 0x317   :  { %v3008_v38 = vpop.f32.mrb[0].mxu0 }
 0x318   :  { %v366_v39 = vpop.f32.mrb[1].mxu0  ;;  %v4069_v41 = vadd.f32 %v3008_v38, %v2820_v37 }
 0x319   :  { %v4063_v40 = vadd.f32 %v2820_v37, %v366_v39 }
 0x31b   :  { %549 = vrot.lane.b32.xlu1 %v4063_v40, %s3727_s11  ;;  %376 = vrot.lane.b32.xlu0 %v4063_v40, %s3728_s7 }
 0x31f   :  { %547 = vrot.lane.b32.xlu1 %v4063_v40, %s3729_s25  ;;  %891 = vrot.lane.b32.xlu0 %v4069_v41, %s3727_s11 }
 0x323   :  { %720 = vrot.lane.b32.xlu1 %v4069_v41, %s3728_s7 }
 0x327   :  { %889 = vrot.lane.b32.xlu1 %v4069_v41, %s3729_s25 }
 0x38d   :  { %v550_v42 = vpop.permute.xlu1 %549  ;;  %v377_v43 = vpop.permute.xlu0 %376 }
 0x38e   :  { %3010 = vmatpush3.xpose.msk.msra.mxu1 %vm378_vm2, %v377_v43  ;;  %3020 = vmatpush3.xpose.msk.msra.mxu0 %vm378_vm2, %v550_v42 }
 0x38f   :  { %3029 = vmatprep.subr.mxu0 %v3725_v36  ;;  %3014 = vmatprep.subr.mxu1 %v3725_v36 }
 0x391   :  { %v548_v44 = vpop.permute.xlu1 %547  ;;  %3012 = vmatmul.mubr.msk.f32.vlgmr.msra.gmra.mrb[0].mxu1 %vm378_vm2, %v4063_v40  ;;  %v892_v46 = vpop.permute.xlu0 %891 }
 0x392   :  { %3022 = vmatmul.mubr.msk.f32.vlgmr.msra.gmra.mrb[2].mxu0 %vm378_vm2, %v548_v44  ;;  %3016 = vmatprep.mubr.msk.f32.mxu1 %vm3726_vm1, %v3725_v36 }
 0x393   :  { %3031 = vmatprep.mubr.msk.f32.mxu0 %vm3726_vm1, %v3725_v36 }
 0x395   :  { %v721_v45 = vpop.permute.xlu1 %720 }
 0x396   :  { %3030 = vmatpush3.xpose.msk.msra.mxu0 %vm378_vm2, %v721_v45 }
 0x397   :  { %3039 = vmatprep.subr.mxu0 %v3725_v36 }
 0x399   :  { %3032 = vmatmul.mubr.msk.f32.vlgmr.msra.gmra.mrb[4].mxu0 %vm378_vm2, %v4069_v41  ;;  %v890_v47 = vpop.permute.xlu1 %889 }
 0x39a   :  { %3040 = vmatpush3.xpose.msk.msra.mxu0 %vm378_vm2, %v892_v46  ;;  %3041 = vmatprep.mubr.msk.f32.mxu0 %vm3726_vm1, %v3725_v36 }
 0x39d   :  { %3042 = vmatmul.mubr.msk.f32.vlgmr.msra.gmra.mrb[6].mxu0 %vm378_vm2, %v890_v47 }
 0x464   :  { %v449_v53 = vpop.f32.mrb[0].mxu1 }
 0x465   :  { %v453_v54 = vmul.f32 0.25, %v449_v53  ;;  %v3013_v55 = vpop.f32.mrb[1].mxu1  ;;  %v621_v56 = vpop.f32.mrb[2].mxu0  ;;  %v1063_v53 = vld [vmem:[%s4416_s6 + $0x10] sm:$0xff] }
 0x466   :  { %v625_v57 = vmul.f32 0.25, %v621_v56  ;;  %v3023_v58 = vpop.f32.mrb[3].mxu0  ;;  %v1064_v55 = vld [vmem:[%s4416_s6 + $0x18] sm:$0xff] }
 0x467   :  { %v458_v59 = vadd.f32 %v4098_v52, %v453_v54  ;;  %v3212_v54 = vpack.c.bf16 %v1062_v51, %v1061_v50  ;;  %v3216_v56 = vpack.c.bf16 %v1064_v55, %v1063_v53  ;;  %v1311_v51 = vld [vmem:[%s4422_s12 + $0x10] sm:$0xff]  ;;  %v1312_v53 = vld [vmem:[%s4422_s12 + $0x18] sm:$0xff]  ;;  %v1313_v55 = vld [vmem:[%s4422_s12 + $0x20] sm:$0xff] }
 0x468   :  { %v626_v61 = vadd.f32 %v625_v57, %v4098_v52 }
 0x469   :  { %v460_v62 = vsel %vm459_vm3, %v458_v59, -inf  ;;  %3213 = vmatprep.subr.bf16.mxu0 %v3212_v54 }
 0x46a   :  { %461 = vmax.xlane.f32.xlu0 %v460_v62  ;;  %v627_v63 = vsel %vm459_vm3, %v626_v61, -inf  ;;  %3215 = vmatpush3.bf16.msra.mxu0 %v3212_v54  ;;  %v3232_v54 = vpack.c.bf16 %v1312_v53, %v1311_v51 }
 0x46b   :  { %628 = vmax.xlane.f32.xlu1 %v627_v63  ;;  %3217 = vmatprep.subr.bf16.mxu0 %v3216_v56 }
 0x46c   :  { %v792_v1 = vpop.f32.mrb[4].mxu0 }
 0x46d   :  { %v796_v2 = vmul.f32 0.25, %v792_v1  ;;  %v3033_v3 = vpop.f32.mrb[5].mxu0 }
 0x46e   :  { %3219 = vmatpush3.bf16.msra.mxu0 %v3216_v56  ;;  %v1314_v56 = vld [vmem:[%s4422_s12 + $0x28] sm:$0xff] }
 0x46f   :  { %v801_v4 = vadd.f32 %v4104_v0, %v796_v2 }
 0x470   :  { %v963_v5 = vpop.f32.mrb[6].mxu0 }
 0x471   :  { %v967_v6 = vmul.f32 0.25, %v963_v5  ;;  %v3043_v7 = vpop.f32.mrb[7].mxu0  ;;  %v802_v8 = vsel %vm459_vm3, %v801_v4, -inf }
 0x472   :  { %803 = vmax.xlane.f32.xlu0 %v802_v8 }
 0x473   :  { %v968_v9 = vadd.f32 %v967_v6, %v4104_v0  ;;  %v2835_v6 = vld [vmem:[#allocation11] ss:$0 sm:$0xff] }
 0x475   :  { %v969_v10 = vsel %vm459_vm3, %v968_v9, -inf }
 0x476   :  { %970 = vmax.xlane.f32.xlu0 %v969_v10 }
 0x4f7   :  { %v462_v11 = vpop.xlane.xlu0 %461 }
 0x4f8   :  { %v463_v12 = vsub.f32 %v458_v59, %v462_v11  ;;  %v629_v13 = vpop.xlane.xlu1 %628 }
 0x4f9   :  { %v630_v14 = vsub.f32 %v626_v61, %v629_v13 }
 0x4fa   :  { %v464_v15 = vmul.f32 1.442695, %v463_v12 }
 0x4fb   :  { %v631_v16 = vmul.f32 1.442695, %v630_v14 }
 0x4fc   :  { %3326 = vpow2.f32 %v464_v15 }
 0x4fd   :  { %3328 = vpow2.f32 %v631_v16 }
 0x4ff   :  { %v804_v17 = vpop.xlane.xlu0 %803 }
 0x500   :  { %v805_v18 = vsub.f32 %v801_v4, %v804_v17 }
 0x502   :  { %v806_v19 = vmul.f32 1.442695, %v805_v18 }
 0x503   :  { %v971_v26 = vpop.xlane.xlu0 %970 }
 0x504   :  { %3330 = vpow2.f32 %v806_v19  ;;  %v972_v27 = vsub.f32 %v968_v9, %v971_v26  ;;  %v1201_v26 = vld [vmem:[%s4420_s10 + $0x10] sm:$0xff] }
 0x506   :  { %v3327_v20 = vpop.eup %3326  ;;  %v973_v28 = vmul.f32 1.442695, %v972_v27  ;;  %v1202_v27 = vld [vmem:[%s4420_s10 + $0x18] sm:$0xff] }
 0x507   :  { %v3329_v21 = vpop.eup %3328  ;;  %v466_v22 = vsel %vm459_vm3, %v3327_v20, 0.0 }
 0x508   :  { %467 = vadd.xlane.f32.xlu0 %v466_v22  ;;  %v633_v23 = vsel %vm459_vm3, %v3329_v21, 0.0  ;;  %3332 = vpow2.f32 %v973_v28  ;;  %v3224_v28 = vpack.c.bf16 %v1202_v27, %v1201_v26 }
 0x509   :  { %634 = vadd.xlane.f32.xlu1 %v633_v23 }
 0x50e   :  { %v3331_v24 = vpop.eup %3330 }
 0x50f   :  { %v808_v25 = vsel %vm459_vm3, %v3331_v24, 0.0 }
 0x510   :  { %809 = vadd.xlane.f32.xlu0 %v808_v25 }
 0x512   :  { %v3333_v29 = vpop.eup %3332 }
 0x513   :  { %v975_v30 = vsel %vm459_vm3, %v3333_v29, 0.0 }
 0x51a   :  { %638 = vrot.lane.b32.xlu1 %v4063_v40, %s3730_s27 }
 0x51e   :  { %813 = vrot.lane.b32.xlu1 %v4069_v41, %s3731_s30 }
 0x526   :  { %471 = vrot.lane.b32.xlu0 %v4063_v40, %s3731_s30 }
 0x542   :  { %976 = vadd.xlane.f32.xlu1 %v975_v30 }
 0x553   :  { %980 = vrot.lane.b32.xlu1 %v4069_v41, %s3730_s27 }
 0x595   :  { %v468_v31 = vpop.xlane.xlu0 %467 }
 0x596   :  { %3334 = vrcp.f32 %v468_v31  ;;  %v635_v32 = vpop.xlane.xlu1 %634 }
 0x597   :  { %3336 = vrcp.f32 %v635_v32 }
 0x59a   :  { %v639_v39 = vpop.permute.xlu1 %638 }
 0x59d   :  { %v810_v34 = vpop.xlane.xlu0 %809 }
 0x59e   :  { %3338 = vrcp.f32 %v810_v34  ;;  %v814_v43 = vpop.permute.xlu1 %813 }
 0x5a0   :  { %v3335_v37 = vpop.eup %3334 }
 0x5a1   :  { %v470_v38 = vmul.f32 %v3335_v37, %v3327_v20  ;;  %v472_v40 = vpop.permute.xlu0 %471  ;;  %v3337_v42 = vpop.eup %3336 }
 0x5a2   :  { %3015 = vmatpush3.msra.mxu1 %v472_v40  ;;  %v637_v41 = vmul.f32 %v3337_v42, %v3329_v21  ;;  %v2839_v42 = vld [vmem:[#allocation14] ss:$0 sm:$0xff] }
 0x5a3   :  { %3017 = vmatmul.mubr.msk.f32.vlgmr.msra.gmra.mrb[2].mxu1 %vm459_vm3, %v470_v38  ;;  %3024 = vmatprep.subr.mxu1 %v3725_v36 }
 0x5a4   :  { %3025 = vmatpush3.msra.mxu1 %v639_v39  ;;  %3026 = vmatprep.mubr.msk.f32.mxu1 %vm3726_vm1, %v3725_v36  ;;  %v2838_v39 = vld [vmem:[#allocation13] ss:$0 sm:$0xff] }
 0x5a5   :  { %3034 = vmatprep.subr.mxu1 %v3725_v36 }
 0x5a7   :  { %3027 = vmatmul.mubr.msk.f32.vlgmr.msra.gmra.mrb[4].mxu1 %vm459_vm3, %v637_v41 }
 0x5a8   :  { %v3339_v44 = vpop.eup %3338  ;;  %3035 = vmatpush3.msra.mxu1 %v814_v43  ;;  %3036 = vmatprep.mubr.msk.f32.mxu1 %vm3726_vm1, %v3725_v36 }
 0x5a9   :  { %v812_v45 = vmul.f32 %v3339_v44, %v3331_v24  ;;  %3044 = vmatprep.subr.mxu1 %v3725_v36  ;;  %v1200_v24 = vld [vmem:[%s4420_s10 + $0x8] sm:$0xff] }
 0x5ab   :  { %3037 = vmatmul.mubr.msk.f32.vlgmr.msra.gmra.mrb[6].mxu1 %vm459_vm3, %v812_v45 }
 0x5ac   :  { %3046 = vmatprep.mubr.msk.f32.mxu1 %vm3726_vm1, %v3725_v36 }
 0x5cf   :  { %v977_v46 = vpop.xlane.xlu1 %976 }
 0x5d0   :  { %3340 = vrcp.f32 %v977_v46 }
 0x5d3   :  { %v981_v47 = vpop.permute.xlu1 %980 }
 0x5d4   :  { %3045 = vmatpush3.msra.mxu1 %v981_v47 }
 0x5da   :  { %v3341_v48 = vpop.eup %3340 }
 0x5db   :  { %v979_v49 = vmul.f32 %v3341_v48, %v3333_v29  ;;  %v1309_v48 = vld [vmem:[%s4422_s12] sm:$0xff] }
 0x5dd   :  { %3047 = vmatmul.mubr.msk.f32.vlgmr.msra.gmra.mrb[8].mxu1 %vm459_vm3, %v979_v49  ;;  %v1310_v49 = vld [vmem:[%s4422_s12 + $0x8] sm:$0xff] }
 0x5de   :  { %v3228_v50 = vpack.c.bf16 %v1310_v49, %v1309_v48 }
 0x5e0   :  { %3229 = vmatprep.subr.bf16.mxu0 %v3228_v50 }
 0x676   :  { %v543_v57 = vpop.f32.mrb[2].mxu1 }
 0x677   :  { %v3018_v58 = vpop.f32.mrb[3].mxu1 }
 0x678   :  { %v1315_v58 = vld [vmem:[%s4422_s12 + $0x30] sm:$0xff] }
 0x67a   :  { %v710_v59 = vpop.f32.mrb[4].mxu1 }
 0x67b   :  { %715 = vrot.lane.b32.xlu0 %v710_v59, %s4447_s3  ;;  %v3028_v60 = vpop.f32.mrb[5].mxu1  ;;  %v1316_v59 = vld [vmem:[%s4422_s12 + $0x38] sm:$0xff] }
 0x67c   :  { %v3240_v60 = vpack.c.bf16 %v1316_v59, %v1315_v58  ;;  %v2847_v59 = vld [vmem:[#allocation20] ss:$0 sm:$0xff] }
 0x67e   :  { %v885_v61 = vpop.f32.mrb[6].mxu1 }
 0x67f   :  { %v3038_v62 = vpop.f32.mrb[7].mxu1 }
 0x6b0   :  { %v1052_v63 = vpop.f32.mrb[8].mxu1 }
 0x6b1   :  { %1057 = vrot.lane.b32.xlu1 %v1052_v63, %s4447_s3  ;;  %v3048_v1 = vpop.f32.mrb[9].mxu1 }
 0x6ed   :  { %v716_v2 = vpop.permute.xlu0 %715 }
 0x6ee   :  { %v718_v3 = vsel %vm378_vm2, %v543_v57, %v716_v2  ;;  %v3236_v57 = vpack.c.bf16 %v1314_v56, %v1313_v55  ;;  %v2846_v55 = vld [vmem:[#allocation19] ss:$0 sm:$0xff] }
 0x6ef   :  { %3057 = vmatprep.mubr.msk.f32.mxu0 %vm238_vm0, %v718_v3 }
 0x723   :  { %v1058_v4 = vpop.permute.xlu1 %1057 }
 0x724   :  { %v1060_v5 = vsel %vm378_vm2, %v885_v61, %v1058_v4  ;;  %v2840_v61 = vld [vmem:[#allocation16] ss:$0 sm:$0xff] }
 0x725   :  { %3058 = vmatmul.mubr.msk.f32.vlgmr.msra.gmra.mrb[8].mxu0 %vm238_vm0, %v1060_v5 }
 0x726   :  { %3231 = vmatpush3.bf16.msra.mxu0 %v3228_v50 }
 0x727   :  { %3233 = vmatprep.subr.bf16.mxu0 %v3232_v54 }
 0x72a   :  { %3235 = vmatpush3.bf16.msra.mxu0 %v3232_v54 }
 0x72b   :  { %3237 = vmatprep.subr.bf16.mxu0 %v3236_v57 }
 0x72e   :  { %3239 = vmatpush3.bf16.msra.mxu0 %v3236_v57 }
 0x72f   :  { %3241 = vmatprep.subr.bf16.mxu0 %v3240_v60 }
 0x732   :  { %3243 = vmatpush3.bf16.msra.mxu0 %v3240_v60 }
 0x733   :  { %3111 = vmatprep.subr.mxu0 %v3725_v36 }
 0x7f8   :  { %v3059_v7 = vpop.f32.mrb[8].mxu0 }
 0x7f9   :  { %v1150_v8 = vadd.f32 %v3059_v7, %v2835_v6  ;;  %v1144_v9 = vpop.f32.mrb[9].mxu0 }
 0x7fa   :  { %v1145_v10 = vadd.f32 %v2835_v6, %v1144_v9 }
 0x7fb   :  { %v1154_v11 = vadd.f32 %v1150_v8, %v4053_v35 }
 0x7fc   :  { %v1153_v12 = vadd.f32 %v1145_v10, %v4049_v33  ;;  %v1199_v33 = vld [vmem:[%s4420_s10] sm:$0xff] }
 0x7fd   :  { %v1160_v13 = vsel %vm238_vm0, %v1154_v11, 0.0  ;;  %v3220_v25 = vpack.c.bf16 %v1200_v24, %v1199_v33 }
 0x7fe   :  { %1161 = vadd.xlane.f32.xlu1 %v1160_v13  ;;  %v1157_v14 = vsel %vm238_vm0, %v1153_v12, 0.0 }
 0x7ff   :  { %1158 = vadd.xlane.f32.xlu0 %v1157_v14  ;;  %3221 = vmatprep.subr.bf16.mxu1 %v3220_v25 }
 0x800   :  { %3223 = vmatpush3.bf16.msra.mxu1 %v3220_v25 }
 0x801   :  { %3225 = vmatprep.subr.bf16.mxu1 %v3224_v28 }
 0x804   :  { %3227 = vmatpush3.bf16.msra.mxu1 %v3224_v28 }
 0x88b   :  { %v1162_v15 = vpop.xlane.xlu1 %1161 }
 0x88c   :  { %v1164_v16 = vmul.f32 0.03125, %v1162_v15  ;;  %v1159_v17 = vpop.xlane.xlu0 %1158 }
 0x88d   :  { %v1163_v18 = vmul.f32 0.03125, %v1159_v17 }
 0x88e   :  { %v1166_v19 = vsub.f32 %v1154_v11, %v1164_v16 }
 0x88f   :  { %v1165_v20 = vsub.f32 %v1153_v12, %v1163_v18 }
 0x890   :  { %v1168_v23 = vmul.f32 %v1166_v19, %v1166_v19 }
 0x891   :  { %v1167_v21 = vmul.f32 %v1165_v20, %v1165_v20 }
 0x892   :  { %v1172_v35 = vsel %vm238_vm0, %v1168_v23, 0.0 }
 0x893   :  { %v1169_v22 = vsel %vm238_vm0, %v1167_v21, 0.0  ;;  %v2843_v21 = vld [vmem:[#allocation17] ss:$0 sm:$0xff] }
 0x894   :  { %1170 = vadd.xlane.f32.xlu0 %v1169_v22 }
 0x898   :  { %1173 = vadd.xlane.f32.xlu0 %v1172_v35 }
 0x921   :  { %v1171_v29 = vpop.xlane.xlu0 %1170 }
 0x922   :  { %v1175_v30 = vmul.f32 0.03125, %v1171_v29 }
 0x924   :  { %v1177_v31 = vadd.f32 1e-12, %v1175_v30 }
 0x925   :  { %v1174_v32 = vpop.xlane.xlu0 %1173 }
 0x926   :  { %3342 = vrsqrt.f32 %v1177_v31  ;;  %v1176_v34 = vmul.f32 0.03125, %v1174_v32 }
 0x928   :  { %v1178_v37 = vadd.f32 1e-12, %v1176_v34 }
 0x92a   :  { %3344 = vrsqrt.f32 %v1178_v37 }
 0x930   :  { %v3343_v38 = vpop.eup %3342 }
 0x931   :  { %v1181_v40 = vmul.f32 %v3343_v38, %v1165_v20 }
 0x933   :  { %v1189_v41 = vmul.f32 %v2838_v39, %v1181_v40 }
 0x934   :  { %v3345_v43 = vpop.eup %3344 }
 0x935   :  { %v1182_v44 = vmul.f32 %v3345_v43, %v1166_v19  ;;  %v1197_v45 = vadd.f32 %v2839_v42, %v1189_v41  ;;  %v2849_v41 = vld [vmem:[%s4448_s13 + $0x28] sm:$0xff] }
 0x937   :  { %v1190_v46 = vmul.f32 %v2838_v39, %v1182_v44  ;;  %3068 = vmatprep.mubr.msk.f32.mxu1 %vm238_vm0, %v1197_v45  ;;  %v2850_v44 = vld [vmem:[%s4448_s13 + $0x30] sm:$0xff] }
 0x939   :  { %v1198_v47 = vadd.f32 %v2839_v42, %v1190_v46  ;;  %v2848_v42 = vld [vmem:[%s4448_s13 + $0x20] sm:$0xff] }
 0x93a   :  { %v3244_v43 = vpack.c.bf16 %v2849_v41, %v2848_v42 }
 0x93b   :  { %3069 = vmatmul.mubr.msk.f32.vlgmr.msra.gmra.mrb[10].mxu1 %vm238_vm0, %v1198_v47 }
 0x93c   :  { %3245 = vmatprep.subr.bf16.mxu1 %v3244_v43 }
 0x93d   :  { %3247 = vmatpush3.bf16.msra.mxu1 %v3244_v43 }
 0xa0e   :  { %v3070_v62 = vpop.f32.mrb[10].mxu1 }
 0xa0f   :  { %v1288_v63 = vadd.f32 %v3070_v62, %v2840_v61  ;;  %v1282_v1 = vpop.f32.mrb[11].mxu1 }
 0xa10   :  { %v1283_v2 = vadd.f32 %v2840_v61, %v1282_v1  ;;  %v2852_v1 = vld [vmem:[#allocation10 + $0x1] ss:$0 sm:$0xff] }
 0xa11   :  { %v1294_v3 = vmul.f32 0.044715, %v1288_v63  ;;  %v1292_v18 = vmul.f32 0.5, %v1288_v63 }
 0xa12   :  { %v1293_v4 = vmul.f32 0.044715, %v1283_v2  ;;  %v1291_v16 = vmul.f32 0.5, %v1283_v2 }
 0xa13   :  { %v1296_v5 = vmul.f32 %v1294_v3, %v1288_v63 }
 0xa14   :  { %v1295_v6 = vmul.f32 %v1293_v4, %v1283_v2 }
 0xa15   :  { %v1298_v7 = vmul.f32 %v1296_v5, %v1288_v63 }
 0xa16   :  { %v1297_v8 = vmul.f32 %v1295_v6, %v1283_v2 }
 0xa17   :  { %v1300_v9 = vadd.f32 %v1298_v7, %v1288_v63 }
 0xa18   :  { %v1299_v10 = vadd.f32 %v1297_v8, %v1283_v2 }
 0xa19   :  { %v1302_v11 = vmul.f32 0.7978846, %v1300_v9 }
 0xa1a   :  { %v1301_v12 = vmul.f32 0.7978846, %v1299_v10 }
 0xa1b   :  { %3346 = vtanh.f32 %v1302_v11 }
 0xa1c   :  { %3348 = vtanh.f32 %v1301_v12 }
 0xa25   :  { %v3347_v13 = vpop.eup %3346 }
 0xa26   :  { %v3349_v14 = vpop.eup %3348  ;;  %v1306_v15 = vadd.f32 1.0, %v3347_v13 }
 0xa27   :  { %v1305_v17 = vadd.f32 1.0, %v3349_v14 }
 0xa28   :  { %v1308_v20 = vmul.f32 %v1306_v15, %v1292_v18 }
 0xa29   :  { %v1307_v19 = vmul.f32 %v1305_v17, %v1291_v16 }
 0xa2b   :  { %3087 = vmatprep.mubr.msk.f32.mxu0 %vm1324_vm4, %v1307_v19 }
 0xa2c   :  { %3088 = vmatmul.mubr.msk.f32.vlgmr.msra.gmra.mrb[10].mxu0 %vm1324_vm4, %v1308_v20 }
 0xa2d   :  { %3113 = vmatprep.mubr.msk.f32.mxu0 %vm3726_vm1, %v3725_v36 }
 0xaff   :  { %v3089_v22 = vpop.f32.mrb[10].mxu0 }
 0xb00   :  { %v1403_v23 = vadd.f32 %v3089_v22, %v2843_v21  ;;  %v1397_v35 = vpop.f32.mrb[11].mxu0 }
 0xb01   :  { %v1398_v33 = vadd.f32 %v2843_v21, %v1397_v35 }
 0xb02   :  { %v1407_v24 = vadd.f32 %v1403_v23, %v1198_v47 }
 0xb03   :  { %v1406_v25 = vadd.f32 %v1398_v33, %v1197_v45  ;;  %v2851_v45 = vld [vmem:[%s4448_s13 + $0x38] sm:$0xff] }
 0xb04   :  { %v1413_v26 = vsel %vm238_vm0, %v1407_v24, 0.0  ;;  %v3248_v46 = vpack.c.bf16 %v2851_v45, %v2850_v44 }
 0xb05   :  { %1414 = vadd.xlane.f32.xlu1 %v1413_v26  ;;  %v1410_v27 = vsel %vm238_vm0, %v1406_v25, 0.0 }
 0xb06   :  { %1411 = vadd.xlane.f32.xlu0 %v1410_v27  ;;  %3249 = vmatprep.subr.bf16.mxu1 %v3248_v46 }
 0xb07   :  { %3251 = vmatpush3.bf16.msra.mxu1 %v3248_v46 }
 0xb08   :  { %3101 = vmatprep.subr.mxu1 %v3725_v36 }
 0xb92   :  { %v1415_v28 = vpop.xlane.xlu1 %1414 }
 0xb93   :  { %v1417_v29 = vmul.f32 0.03125, %v1415_v28  ;;  %v1412_v30 = vpop.xlane.xlu0 %1411 }
 0xb94   :  { %v1416_v31 = vmul.f32 0.03125, %v1412_v30 }
 0xb95   :  { %v1419_v32 = vsub.f32 %v1407_v24, %v1417_v29 }
 0xb96   :  { %v1418_v34 = vsub.f32 %v1406_v25, %v1416_v31 }
 0xb97   :  { %v1421_v37 = vmul.f32 %v1419_v32, %v1419_v32 }
 0xb98   :  { %v1420_v38 = vmul.f32 %v1418_v34, %v1418_v34 }
 0xb99   :  { %v1425_v39 = vsel %vm238_vm0, %v1421_v37, 0.0 }
 0xb9a   :  { %1426 = vadd.xlane.f32.xlu1 %v1425_v39  ;;  %v1422_v40 = vsel %vm238_vm0, %v1420_v38, 0.0 }
 0xb9b   :  { %1423 = vadd.xlane.f32.xlu0 %v1422_v40 }
 0xc27   :  { %v1427_v47 = vpop.xlane.xlu1 %1426 }
 0xc28   :  { %v1429_v48 = vmul.f32 0.03125, %v1427_v47  ;;  %v1424_v49 = vpop.xlane.xlu0 %1423 }
 0xc29   :  { %v1428_v50 = vmul.f32 0.03125, %v1424_v49 }
 0xc2a   :  { %v1431_v51 = vadd.f32 1e-12, %v1429_v48 }
 0xc2b   :  { %v1430_v53 = vadd.f32 1e-12, %v1428_v50 }
 0xc2c   :  { %3350 = vrsqrt.f32 %v1431_v51 }
 0xc2d   :  { %3352 = vrsqrt.f32 %v1430_v53 }
 0xc36   :  { %v3351_v54 = vpop.eup %3350 }
 0xc37   :  { %v3353_v56 = vpop.eup %3352  ;;  %v1435_v57 = vmul.f32 %v3351_v54, %v1419_v32 }
 0xc38   :  { %v1434_v58 = vmul.f32 %v3353_v56, %v1418_v34 }
 0xc39   :  { %v1443_v60 = vmul.f32 %v2846_v55, %v1435_v57 }
 0xc3a   :  { %v1442_v61 = vmul.f32 %v2846_v55, %v1434_v58 }
 0xc3b   :  { %v4221_v63 = vadd.f32 %v2847_v59, %v1443_v60 }
 0xc3c   :  { %v4219_v62 = vadd.f32 %v2847_v59, %v1442_v61 }
 0xc3e   :  { %3098 = vmatprep.mubr.msk.f32.mxu1 %vm238_vm0, %v4219_v62 }
 0xc3f   :  { %3099 = vmatmul.mubr.msk.f32.vlgmr.msra.gmra.mrb[12].mxu1 %vm238_vm0, %v4221_v63 }
 0xc40   :  { %3103 = vmatprep.mubr.msk.f32.mxu1 %vm3726_vm1, %v3725_v36 }
 0xd12   :  { %v3100_v2 = vpop.f32.mrb[12].mxu1 }
 0xd13   :  { %v1537_v3 = vpop.f32.mrb[13].mxu1  ;;  %v4235_v5 = vadd.f32 %v3100_v2, %v2852_v1 }
 0xd14   :  { %v4229_v4 = vadd.f32 %v2852_v1, %v1537_v3 }
 0xd16   :  { %1714 = vrot.lane.b32.xlu1 %v4229_v4, %s3727_s11  ;;  %1547 = vrot.lane.b32.xlu0 %v4229_v4, %s3728_s7 }
 0xd1a   :  { %1712 = vrot.lane.b32.xlu1 %v4229_v4, %s3729_s25  ;;  %2052 = vrot.lane.b32.xlu0 %v4235_v5, %s3727_s11 }
 0xd1e   :  { %1885 = vrot.lane.b32.xlu1 %v4235_v5, %s3728_s7 }
 0xd22   :  { %2050 = vrot.lane.b32.xlu1 %v4235_v5, %s3729_s25 }
 0xd88   :  { %v1715_v6 = vpop.permute.xlu1 %1714  ;;  %v1548_v7 = vpop.permute.xlu0 %1547 }
 0xd89   :  { %3102 = vmatpush3.xpose.msk.msra.mxu1 %vm378_vm2, %v1548_v7  ;;  %3112 = vmatpush3.xpose.msk.msra.mxu0 %vm378_vm2, %v1715_v6  ;;  %v2867_v7 = vld [vmem:[%s4416_s6 + $0x20] sm:$0xff] }
 0xd8a   :  { %3121 = vmatprep.subr.mxu0 %v3725_v36  ;;  %3106 = vmatprep.subr.mxu1 %v3725_v36 }
 0xd8c   :  { %v1713_v8 = vpop.permute.xlu1 %1712  ;;  %3104 = vmatmul.mubr.msk.f32.vlgmr.msra.gmra.mrb[14].mxu1 %vm378_vm2, %v4229_v4  ;;  %v2053_v10 = vpop.permute.xlu0 %2052 }
 0xd8d   :  { %3114 = vmatmul.mubr.msk.f32.vlgmr.msra.gmra.mrb[12].mxu0 %vm378_vm2, %v1713_v8  ;;  %3108 = vmatprep.mubr.msk.f32.mxu1 %vm3726_vm1, %v3725_v36  ;;  %v2868_v8 = vld [vmem:[%s4416_s6 + $0x28] sm:$0xff] }
 0xd8e   :  { %3123 = vmatprep.mubr.msk.f32.mxu0 %vm3726_vm1, %v3725_v36 }
 0xd90   :  { %v1886_v9 = vpop.permute.xlu1 %1885 }
 0xd91   :  { %3122 = vmatpush3.xpose.msk.msra.mxu0 %vm378_vm2, %v1886_v9  ;;  %v2869_v9 = vld [vmem:[%s4416_s6 + $0x30] sm:$0xff] }
 0xd92   :  { %3131 = vmatprep.subr.mxu0 %v3725_v36 }
 0xd94   :  { %3124 = vmatmul.mubr.msk.f32.vlgmr.msra.gmra.mrb[14].mxu0 %vm378_vm2, %v4235_v5  ;;  %v2051_v11 = vpop.permute.xlu1 %2050 }
 0xd95   :  { %3132 = vmatpush3.xpose.msk.msra.mxu0 %vm378_vm2, %v2053_v10  ;;  %3133 = vmatprep.mubr.msk.f32.mxu0 %vm3726_vm1, %v3725_v36  ;;  %v3252_v10 = vpack.c.bf16 %v2868_v8, %v2867_v7  ;;  %v2886_v7 = vld [vmem:[%s4422_s12 + $0x58] sm:$0xff] }
 0xd97   :  { %3253 = vmatprep.subr.bf16.mxu0 %v3252_v10 }
 0xd98   :  { %3134 = vmatmul.mubr.msk.f32.vlgmr.msra.gmra.mrb[16].mxu0 %vm378_vm2, %v2051_v11  ;;  %v2870_v11 = vld [vmem:[%s4416_s6 + $0x38] sm:$0xff] }
 0xd99   :  { %3255 = vmatpush3.bf16.msra.mxu0 %v3252_v10  ;;  %v2888_v10 = vld [vmem:[%s4422_s12 + $0x68] sm:$0xff] }
 0xe5f   :  { %v1619_v12 = vpop.f32.mrb[14].mxu1 }
 0xe60   :  { %v1623_v13 = vmul.f32 0.25, %v1619_v12  ;;  %v3105_v14 = vpop.f32.mrb[15].mxu1  ;;  %v1786_v15 = vpop.f32.mrb[12].mxu0  ;;  %v3256_v12 = vpack.c.bf16 %v2870_v11, %v2869_v9  ;;  %v2887_v9 = vld [vmem:[%s4422_s12 + $0x60] sm:$0xff] }
 0xe61   :  { %v1790_v16 = vmul.f32 0.25, %v1786_v15  ;;  %v3115_v17 = vpop.f32.mrb[13].mxu0  ;;  %v3276_v11 = vpack.c.bf16 %v2888_v10, %v2887_v9 }
 0xe62   :  { %v1624_v18 = vadd.f32 %v1623_v13, %v4098_v52  ;;  %3257 = vmatprep.subr.bf16.mxu0 %v3256_v12 }
 0xe63   :  { %v1791_v19 = vadd.f32 %v1790_v16, %v4098_v52  ;;  %3259 = vmatpush3.bf16.msra.mxu0 %v3256_v12  ;;  %v2889_v12 = vld [vmem:[%s4422_s12 + $0x70] sm:$0xff] }
 0xe64   :  { %v1625_v20 = vsel %vm459_vm3, %v1624_v18, -inf }
 0xe65   :  { %1626 = vmax.xlane.f32.xlu0 %v1625_v20  ;;  %v1792_v21 = vsel %vm459_vm3, %v1791_v19, -inf }
 0xe66   :  { %1793 = vmax.xlane.f32.xlu1 %v1792_v21 }
 0xe67   :  { %v1957_v22 = vpop.f32.mrb[14].mxu0 }
 0xe68   :  { %v1961_v23 = vmul.f32 0.25, %v1957_v22  ;;  %v3125_v35 = vpop.f32.mrb[15].mxu0 }
 0xe6a   :  { %v1962_v33 = vadd.f32 %v1961_v23, %v4104_v0 }
 0xe6b   :  { %v2124_v24 = vpop.f32.mrb[16].mxu0 }
 0xe6c   :  { %v2128_v25 = vmul.f32 0.25, %v2124_v24  ;;  %v3135_v26 = vpop.f32.mrb[17].mxu0  ;;  %v1963_v27 = vsel %vm459_vm3, %v1962_v33, -inf }
 0xe6d   :  { %1964 = vmax.xlane.f32.xlu0 %v1963_v27 }
 0xe6e   :  { %v2129_v28 = vadd.f32 %v2128_v25, %v4104_v0 }
 0xe70   :  { %v2130_v52 = vsel %vm459_vm3, %v2129_v28, -inf }
 0xe71   :  { %2131 = vmax.xlane.f32.xlu0 %v2130_v52 }
 0xef2   :  { %v1627_v29 = vpop.xlane.xlu0 %1626 }
 0xef3   :  { %v1628_v30 = vsub.f32 %v1624_v18, %v1627_v29  ;;  %v1794_v31 = vpop.xlane.xlu1 %1793 }
 0xef4   :  { %v1795_v32 = vsub.f32 %v1791_v19, %v1794_v31 }
 0xef5   :  { %v1629_v34 = vmul.f32 1.442695, %v1628_v30 }
 0xef6   :  { %v1796_v37 = vmul.f32 1.442695, %v1795_v32 }
 0xef7   :  { %3354 = vpow2.f32 %v1629_v34 }
 0xef8   :  { %3356 = vpow2.f32 %v1796_v37 }
 0xefa   :  { %v1965_v38 = vpop.xlane.xlu0 %1964 }
 0xefb   :  { %v1966_v39 = vsub.f32 %v1962_v33, %v1965_v38  ;;  %v2871_v33 = vld [vmem:[#allocation11 + $0x1] ss:$0 sm:$0xff] }
 0xefd   :  { %v1967_v40 = vmul.f32 1.442695, %v1966_v39 }
 0xefe   :  { %v2132_v46 = vpop.xlane.xlu0 %2131 }
 0xeff   :  { %3358 = vpow2.f32 %v1967_v40  ;;  %v2133_v47 = vsub.f32 %v2129_v28, %v2132_v46 }
 0xf01   :  { %v3355_v42 = vpop.eup %3354  ;;  %v2134_v48 = vmul.f32 1.442695, %v2133_v47 }
 0xf02   :  { %v3357_v41 = vpop.eup %3356  ;;  %v1631_v43 = vsel %vm459_vm3, %v3355_v42, 0.0 }
 0xf03   :  { %1632 = vadd.xlane.f32.xlu0 %v1631_v43  ;;  %v1798_v0 = vsel %vm459_vm3, %v3357_v41, 0.0  ;;  %3360 = vpow2.f32 %v2134_v48  ;;  %v2877_v43 = vld [vmem:[%s4420_s10 + $0x28] sm:$0xff] }
 0xf04   :  { %1799 = vadd.xlane.f32.xlu1 %v1798_v0 }
 0xf09   :  { %v3359_v44 = vpop.eup %3358 }
 0xf0a   :  { %v1969_v45 = vsel %vm459_vm3, %v3359_v44, 0.0 }
 0xf0b   :  { %1970 = vadd.xlane.f32.xlu0 %v1969_v45  ;;  %v2879_v45 = vld [vmem:[%s4420_s10 + $0x38] sm:$0xff] }
 0xf0d   :  { %v3361_v49 = vpop.eup %3360 }
 0xf0e   :  { %v2136_v50 = vsel %vm459_vm3, %v3361_v49, 0.0 }
 0xf15   :  { %1803 = vrot.lane.b32.xlu1 %v4229_v4, %s3730_s27 }
 0xf19   :  { %1974 = vrot.lane.b32.xlu1 %v4235_v5, %s3731_s30 }
 0xf21   :  { %1636 = vrot.lane.b32.xlu0 %v4229_v4, %s3731_s30 }
 0xf3d   :  { %2137 = vadd.xlane.f32.xlu1 %v2136_v50 }
 0xf4e   :  { %2141 = vrot.lane.b32.xlu1 %v4235_v5, %s3730_s27 }
 0xf90   :  { %v1633_v51 = vpop.xlane.xlu0 %1632 }
 0xf91   :  { %3362 = vrcp.f32 %v1633_v51  ;;  %v1800_v53 = vpop.xlane.xlu1 %1799 }
 0xf92   :  { %3364 = vrcp.f32 %v1800_v53 }
 0xf95   :  { %v1804_v57 = vpop.permute.xlu1 %1803 }
 0xf98   :  { %v1971_v54 = vpop.xlane.xlu0 %1970 }
 0xf99   :  { %3366 = vrcp.f32 %v1971_v54  ;;  %v1975_v61 = vpop.permute.xlu1 %1974 }
 0xf9b   :  { %v3363_v55 = vpop.eup %3362 }
 0xf9c   :  { %v1635_v56 = vmul.f32 %v3363_v55, %v3355_v42  ;;  %v1637_v58 = vpop.permute.xlu0 %1636  ;;  %v3365_v59 = vpop.eup %3364  ;;  %v2874_v55 = vld [vmem:[#allocation13 + $0x1] ss:$0 sm:$0xff] }
 0xf9d   :  { %3107 = vmatpush3.msra.mxu1 %v1637_v58  ;;  %v1802_v60 = vmul.f32 %v3365_v59, %v3357_v41 }
 0xf9e   :  { %3109 = vmatmul.mubr.msk.f32.vlgmr.msra.gmra.mrb[16].mxu1 %vm459_vm3, %v1635_v56  ;;  %3116 = vmatprep.subr.mxu1 %v3725_v36 }
 0xf9f   :  { %3117 = vmatpush3.msra.mxu1 %v1804_v57  ;;  %3118 = vmatprep.mubr.msk.f32.mxu1 %vm3726_vm1, %v3725_v36  ;;  %v2875_v57 = vld [vmem:[#allocation14 + $0x1] ss:$0 sm:$0xff] }
 0xfa0   :  { %3126 = vmatprep.subr.mxu1 %v3725_v36 }
 0xfa2   :  { %3119 = vmatmul.mubr.msk.f32.vlgmr.msra.gmra.mrb[18].mxu1 %vm459_vm3, %v1802_v60 }
 0xfa3   :  { %v3367_v1 = vpop.eup %3366  ;;  %3127 = vmatpush3.msra.mxu1 %v1975_v61  ;;  %3128 = vmatprep.mubr.msk.f32.mxu1 %vm3726_vm1, %v3725_v36 }
 0xfa4   :  { %v1973_v2 = vmul.f32 %v3367_v1, %v3359_v44  ;;  %3136 = vmatprep.subr.mxu1 %v3725_v36  ;;  %v2878_v44 = vld [vmem:[%s4420_s10 + $0x30] sm:$0xff] }
 0xfa5   :  { %v3264_v46 = vpack.c.bf16 %v2879_v45, %v2878_v44 }
 0xfa6   :  { %3129 = vmatmul.mubr.msk.f32.vlgmr.msra.gmra.mrb[20].mxu1 %vm459_vm3, %v1973_v2 }
 0xfa7   :  { %3138 = vmatprep.mubr.msk.f32.mxu1 %vm3726_vm1, %v3725_v36 }
 0xfca   :  { %v2138_v3 = vpop.xlane.xlu1 %2137 }
 0xfcb   :  { %3368 = vrcp.f32 %v2138_v3  ;;  %v2883_v3 = vld [vmem:[%s4422_s12 + $0x40] sm:$0xff] }
 0xfce   :  { %v2142_v4 = vpop.permute.xlu1 %2141 }
 0xfcf   :  { %3137 = vmatpush3.msra.mxu1 %v2142_v4  ;;  %v2884_v4 = vld [vmem:[%s4422_s12 + $0x48] sm:$0xff] }
 0xfd5   :  { %v3369_v5 = vpop.eup %3368 }
 0xfd6   :  { %v2140_v6 = vmul.f32 %v3369_v5, %v3361_v49  ;;  %v3268_v5 = vpack.c.bf16 %v2884_v4, %v2883_v3 }
 0xfd8   :  { %3139 = vmatmul.mubr.msk.f32.vlgmr.msra.gmra.mrb[22].mxu1 %vm459_vm3, %v2140_v6  ;;  %v2885_v6 = vld [vmem:[%s4422_s12 + $0x50] sm:$0xff]  ;;  %3269 = vmatprep.subr.bf16.mxu0 %v3268_v5 }
 0xfd9   :  { %v3272_v8 = vpack.c.bf16 %v2886_v7, %v2885_v6 }
0x1071   :  { %v1708_v13 = vpop.f32.mrb[16].mxu1 }
0x1072   :  { %v3110_v14 = vpop.f32.mrb[17].mxu1 }
0x1075   :  { %v1875_v15 = vpop.f32.mrb[18].mxu1 }
0x1076   :  { %1880 = vrot.lane.b32.xlu0 %v1875_v15, %s4447_s3  ;;  %v3120_v16 = vpop.f32.mrb[19].mxu1  ;;  %v2880_v15 = vld [vmem:[#allocation16 + $0x1] ss:$0 sm:$0xff] }
0x1079   :  { %v2046_v17 = vpop.f32.mrb[20].mxu1 }
0x107a   :  { %v3130_v18 = vpop.f32.mrb[21].mxu1 }
0x10ab   :  { %v2213_v19 = vpop.f32.mrb[22].mxu1 }
0x10ac   :  { %2218 = vrot.lane.b32.xlu1 %v2213_v19, %s4447_s3  ;;  %v3140_v20 = vpop.f32.mrb[23].mxu1 }
0x10e8   :  { %v1881_v21 = vpop.permute.xlu0 %1880 }
0x10e9   :  { %v1883_v22 = vsel %vm378_vm2, %v1708_v13, %v1881_v21  ;;  %v2890_v13 = vld [vmem:[%s4422_s12 + $0x78] sm:$0xff] }
0x10ea   :  { %3149 = vmatprep.mubr.msk.f32.mxu0 %vm238_vm0, %v1883_v22  ;;  %v3280_v14 = vpack.c.bf16 %v2890_v13, %v2889_v12  ;;  %v2895_v12 = vld [vmem:[#allocation20 + $0x1] ss:$0 sm:$0xff] }
0x111e   :  { %v2219_v23 = vpop.permute.xlu1 %2218 }
0x111f   :  { %v2221_v35 = vsel %vm378_vm2, %v2046_v17, %v2219_v23 }
0x1120   :  { %3150 = vmatmul.mubr.msk.f32.vlgmr.msra.gmra.mrb[18].mxu0 %vm238_vm0, %v2221_v35 }
0x1121   :  { %3271 = vmatpush3.bf16.msra.mxu0 %v3268_v5 }
0x1122   :  { %3273 = vmatprep.subr.bf16.mxu0 %v3272_v8 }
0x1125   :  { %3275 = vmatpush3.bf16.msra.mxu0 %v3272_v8  ;;  %v2894_v8 = vld [vmem:[#allocation19 + $0x1] ss:$0 sm:$0xff] }
0x1126   :  { %3277 = vmatprep.subr.bf16.mxu0 %v3276_v11 }
0x1129   :  { %3279 = vmatpush3.bf16.msra.mxu0 %v3276_v11 }
0x112a   :  { %3281 = vmatprep.subr.bf16.mxu0 %v3280_v14 }
0x112d   :  { %3283 = vmatpush3.bf16.msra.mxu0 %v3280_v14 }
0x11f3   :  { %v3151_v24 = vpop.f32.mrb[18].mxu0 }
0x11f4   :  { %v2313_v25 = vadd.f32 %v3151_v24, %v2871_v33  ;;  %v2307_v26 = vpop.f32.mrb[19].mxu0 }
0x11f5   :  { %v2308_v27 = vadd.f32 %v2871_v33, %v2307_v26 }
0x11f6   :  { %v2317_v28 = vadd.f32 %v2313_v25, %v4221_v63 }
0x11f7   :  { %v2316_v52 = vadd.f32 %v2308_v27, %v4219_v62  ;;  %v2876_v62 = vld [vmem:[%s4420_s10 + $0x20] sm:$0xff] }
0x11f8   :  { %v2325_v29 = vsel %vm238_vm0, %v2317_v28, 0.0  ;;  %v3260_v0 = vpack.c.bf16 %v2877_v43, %v2876_v62 }
0x11f9   :  { %2326 = vadd.xlane.f32.xlu1 %v2325_v29  ;;  %v2322_v30 = vsel %vm238_vm0, %v2316_v52, 0.0 }
0x11fa   :  { %2323 = vadd.xlane.f32.xlu0 %v2322_v30  ;;  %3261 = vmatprep.subr.bf16.mxu1 %v3260_v0 }
0x11fb   :  { %3263 = vmatpush3.bf16.msra.mxu1 %v3260_v0 }
0x11fc   :  { %3265 = vmatprep.subr.bf16.mxu1 %v3264_v46 }
0x11ff   :  { %3267 = vmatpush3.bf16.msra.mxu1 %v3264_v46 }
0x1286   :  { %v2327_v31 = vpop.xlane.xlu1 %2326 }
0x1287   :  { %v2329_v32 = vmul.f32 0.03125, %v2327_v31  ;;  %v2324_v34 = vpop.xlane.xlu0 %2323 }
0x1288   :  { %v2328_v37 = vmul.f32 0.03125, %v2324_v34 }
0x1289   :  { %v2331_v38 = vsub.f32 %v2317_v28, %v2329_v32 }
0x128a   :  { %v2330_v39 = vsub.f32 %v2316_v52, %v2328_v37 }
0x128b   :  { %v2333_v41 = vmul.f32 %v2331_v38, %v2331_v38 }
0x128c   :  { %v2332_v40 = vmul.f32 %v2330_v39, %v2330_v39 }
0x128d   :  { %v2337_v63 = vsel %vm238_vm0, %v2333_v41, 0.0 }
0x128e   :  { %v2334_v42 = vsel %vm238_vm0, %v2332_v40, 0.0 }
0x128f   :  { %2335 = vadd.xlane.f32.xlu0 %v2334_v42 }
0x1293   :  { %2338 = vadd.xlane.f32.xlu0 %v2337_v63 }
0x131c   :  { %v2336_v47 = vpop.xlane.xlu0 %2335 }
0x131d   :  { %v2340_v48 = vmul.f32 0.03125, %v2336_v47 }
0x131f   :  { %v2342_v49 = vadd.f32 1e-12, %v2340_v48 }
0x1320   :  { %v2339_v50 = vpop.xlane.xlu0 %2338 }
0x1321   :  { %3370 = vrsqrt.f32 %v2342_v49  ;;  %v2341_v51 = vmul.f32 0.03125, %v2339_v50 }
0x1323   :  { %v2343_v53 = vadd.f32 1e-12, %v2341_v51 }
0x1325   :  { %3372 = vrsqrt.f32 %v2343_v53 }
0x132b   :  { %v3371_v54 = vpop.eup %3370 }
0x132c   :  { %v2346_v56 = vmul.f32 %v3371_v54, %v2330_v39 }
0x132e   :  { %v2354_v58 = vmul.f32 %v2874_v55, %v2346_v56  ;;  %v2628_v56 = vld [vmem:[%s4426_s16 + $0x8] sm:$0xff] }
0x132f   :  { %v3373_v59 = vpop.eup %3372 }
0x1330   :  { %v2347_v60 = vmul.f32 %v3373_v59, %v2331_v38  ;;  %v2362_v61 = vadd.f32 %v2875_v57, %v2354_v58  ;;  %v2891_v38 = vld [vmem:[#allocation17 + $0x1] ss:$0 sm:$0xff]  ;;  %v2629_v58 = vld [vmem:[%s4426_s16 + $0x10] sm:$0xff]  ;;  %v2630_v59 = vld [vmem:[%s4426_s16 + $0x18] sm:$0xff] }
0x1332   :  { %v2355_v1 = vmul.f32 %v2874_v55, %v2347_v60  ;;  %3160 = vmatprep.mubr.msk.f32.mxu1 %vm238_vm0, %v2362_v61  ;;  %v2627_v55 = vld [vmem:[%s4426_s16] sm:$0xff]  ;;  %v3732_v60 = vmov 0.0|0.0  }
0x1333   :  { %3284 = vmatprep.subr.bf16.mxu1 %v3732_v60 }
0x1334   :  { %v2363_v2 = vadd.f32 %v2875_v57, %v2355_v1  ;;  %v3285_v57 = vpack.c.bf16 %v2628_v56, %v2627_v55 }
0x1336   :  { %3161 = vmatmul.mubr.msk.f32.vlgmr.msra.gmra.mrb[24].mxu1 %vm238_vm0, %v2363_v2 }
0x1337   :  { %3190 = vmatprep.mubr.msk.f32.mxu1 %vm3726_vm1, %v3725_v36  ;;  %3286 = vmatpush3.bf16.msra.mxu1 %v3285_v57 }
0x1338   :  { %3287 = vmatprep.subr.bf16.mxu1 %v3732_v60 }
0x1409   :  { %v3162_v16 = vpop.f32.mrb[24].mxu1 }
0x140a   :  { %v2455_v17 = vadd.f32 %v3162_v16, %v2880_v15  ;;  %v2449_v18 = vpop.f32.mrb[25].mxu1 }
0x140b   :  { %v2450_v19 = vadd.f32 %v2880_v15, %v2449_v18 }
0x140c   :  { %v2461_v20 = vmul.f32 0.044715, %v2455_v17  ;;  %v2459_v32 = vmul.f32 0.5, %v2455_v17 }
0x140d   :  { %v2460_v21 = vmul.f32 0.044715, %v2450_v19  ;;  %v2458_v30 = vmul.f32 0.5, %v2450_v19 }
0x140e   :  { %v2463_v22 = vmul.f32 %v2461_v20, %v2455_v17  ;;  %v2713_v20 = vld [vmem:[%s4428_s18 + $0x8] sm:$0xff] }
0x140f   :  { %v2462_v23 = vmul.f32 %v2460_v21, %v2450_v19  ;;  %v2714_v21 = vld [vmem:[%s4428_s18 + $0x10] sm:$0xff] }
0x1410   :  { %v2465_v35 = vmul.f32 %v2463_v22, %v2455_v17 }
0x1411   :  { %v2464_v33 = vmul.f32 %v2462_v23, %v2450_v19  ;;  %v2715_v23 = vld [vmem:[%s4428_s18 + $0x18] sm:$0xff] }
0x1412   :  { %v2467_v24 = vadd.f32 %v2465_v35, %v2455_v17  ;;  %v3294_v35 = vpack.c.bf16 %v2715_v23, %v2714_v21 }
0x1413   :  { %v2466_v25 = vadd.f32 %v2464_v33, %v2450_v19  ;;  %v2712_v19 = vld [vmem:[%s4428_s18] sm:$0xff]  ;;  %s3670_s18 = scalar_lea.vmem %s2804_s28, 32 }
0x1414   :  { %v2469_v26 = vmul.f32 0.7978846, %v2467_v24  ;;  %v3291_v22 = vpack.c.bf16 %v2713_v20, %v2712_v19  ;;  %p3671_p6 = scmp.ne.s32.totalorder %s2804_s28, %s3670_s18  ;;  %p3676_p8 = scmp.lt.s32.totalorder %s3670_s18, %s3670_s18 }
0x1415   :  { %v2468_v27 = vmul.f32 0.7978846, %v2466_v25 }
0x1416   :  { %3374 = vtanh.f32 %v2469_v26  ;;  %p3677_p9 = por %p3676_p8, %p3675_p7 }
0x1417   :  { %3376 = vtanh.f32 %v2468_v27  ;;  %v2898_v27 = vld [vmem:[%s4429_s19] ss:$0 sm:$0xff] }
0x1418   :  { %p3678_p10 = pnand %p3677_p9, %p3671_p6 }
0x1420   :  { %v3375_v28 = vpop.eup %3374 }
0x1421   :  { %v3377_v52 = vpop.eup %3376  ;;  %v2473_v29 = vadd.f32 1.0, %v3375_v28 }
0x1422   :  { %v2472_v31 = vadd.f32 1.0, %v3377_v52 }
0x1423   :  { %v2475_v37 = vmul.f32 %v2473_v29, %v2459_v32 }
0x1424   :  { %v2474_v34 = vmul.f32 %v2472_v31, %v2458_v30 }
0x1426   :  { %3179 = vmatprep.mubr.msk.f32.mxu0 %vm1324_vm4, %v2474_v34 }
0x1427   :  { %3180 = vmatmul.mubr.msk.f32.vlgmr.msra.gmra.mrb[20].mxu0 %vm1324_vm4, %v2475_v37 }
0x14fa   :  { %v3181_v39 = vpop.f32.mrb[20].mxu0 }
0x14fb   :  { %v2571_v40 = vadd.f32 %v3181_v39, %v2891_v38  ;;  %v2565_v42 = vpop.f32.mrb[21].mxu0 }
0x14fc   :  { %v2566_v41 = vadd.f32 %v2891_v38, %v2565_v42 }
0x14fd   :  { %v2575_v63 = vadd.f32 %v2571_v40, %v2363_v2 }
0x14fe   :  { %v2574_v62 = vadd.f32 %v2566_v41, %v2362_v61  ;;  %v3288_v61 = vpack.c.bf16 %v2630_v59, %v2629_v58 }
0x14ff   :  { %v2583_v43 = vsel %vm238_vm0, %v2575_v63, 0.0 }
0x1500   :  { %2584 = vadd.xlane.f32.xlu0 %v2583_v43  ;;  %v2580_v0 = vsel %vm238_vm0, %v2574_v62, 0.0  ;;  %3289 = vmatpush3.bf16.msra.mxu1 %v3288_v61 }
0x1501   :  { %2581 = vadd.xlane.f32.xlu1 %v2580_v0  ;;  %3290 = vmatprep.subr.bf16.mxu1 %v3732_v60 }
0x158d   :  { %v2585_v44 = vpop.xlane.xlu0 %2584 }
0x158e   :  { %v2587_v45 = vmul.f32 0.03125, %v2585_v44  ;;  %v2582_v46 = vpop.xlane.xlu1 %2581 }
0x158f   :  { %v2586_v47 = vmul.f32 0.03125, %v2582_v46 }
0x1590   :  { %v2589_v48 = vsub.f32 %v2575_v63, %v2587_v45 }
0x1591   :  { %v2588_v49 = vsub.f32 %v2574_v62, %v2586_v47 }
0x1592   :  { %v2591_v50 = vmul.f32 %v2589_v48, %v2589_v48 }
0x1593   :  { %v2590_v51 = vmul.f32 %v2588_v49, %v2588_v49 }
0x1594   :  { %v2595_v53 = vsel %vm238_vm0, %v2591_v50, 0.0 }
0x1595   :  { %2596 = vadd.xlane.f32.xlu0 %v2595_v53  ;;  %v2592_v54 = vsel %vm238_vm0, %v2590_v51, 0.0 }
0x1596   :  { %2593 = vadd.xlane.f32.xlu1 %v2592_v54 }
0x1622   :  { %v2597_v1 = vpop.xlane.xlu0 %2596 }
0x1623   :  { %v2599_v2 = vmul.f32 0.03125, %v2597_v1  ;;  %v2594_v3 = vpop.xlane.xlu1 %2593 }
0x1624   :  { %v2598_v4 = vmul.f32 0.03125, %v2594_v3 }
0x1625   :  { %v2601_v5 = vadd.f32 1e-12, %v2599_v2 }
0x1626   :  { %v2600_v6 = vadd.f32 1e-12, %v2598_v4 }
0x1627   :  { %3378 = vrsqrt.f32 %v2601_v5 }
0x1628   :  { %3380 = vrsqrt.f32 %v2600_v6 }
0x1631   :  { %v3379_v7 = vpop.eup %3378 }
0x1632   :  { %v3381_v9 = vpop.eup %3380  ;;  %v2605_v10 = vmul.f32 %v3379_v7, %v2589_v48 }
0x1633   :  { %v2604_v11 = vmul.f32 %v3381_v9, %v2588_v49 }
0x1634   :  { %v2613_v13 = vmul.f32 %v2894_v8, %v2605_v10 }
0x1635   :  { %v2612_v14 = vmul.f32 %v2894_v8, %v2604_v11 }
0x1636   :  { %v2621_v15 = vadd.f32 %v2895_v12, %v2613_v13 }
0x1637   :  { %v2620_v16 = vadd.f32 %v2895_v12, %v2612_v14 }
0x1638   :  { %v2623_v17 = vrot.slane %v2621_v15, 7 }
0x163a   :  { %v2626_v18 = vsel %vm2625_vm5, %v2620_v16, %v2623_v17 }
0x163b   :  { %3191 = vmatmul.mubr.msk.f32.vlgmr.msra.gmra.mrb[26].mxu1 %vm238_vm0, %v2626_v18 }
0x163c   :  { %3201 = vmatprep.mubr.msk.f32.mxu1 %vm3726_vm1, %v3725_v36  ;;  %3292 = vmatpush3.bf16.msra.mxu1 %v3291_v22  ;;  %v2896_v36 = vld [vmem:[#allocation22] ss:$0 sm:$0xff] }
0x163d   :  { %3293 = vmatprep.subr.bf16.mxu1 %v3732_v60 }
0x1640   :  { %3295 = vmatpush3.bf16.msra.mxu1 %v3294_v35 }
0x170e   :  { %v2707_v33 = vpop.f32.mrb[26].mxu1 }
0x170f   :  { %v2708_v24 = vadd.f32 %v2896_v36, %v2707_v33  ;;  %v3192_v25 = vpop.f32.mrb[27].mxu1 }
0x1711   :  { %3382 = vtanh.f32 %v2708_v24 }
0x171b   :  { %v3383_v26 = vpop.eup %3382 }
0x171c   :  { %3202 = vmatmul.mubr.msk.f32.vlgmr.msra.gmra.mrb[28].mxu1 %vm238_vm0, %v3383_v26 }
0x17ef   :  { %v2792_v28 = vpop.f32.mrb[28].mxu1 }
0x17f0   :  { %v2793_v52 = vadd.f32 %v2898_v27, %v2792_v28  ;;  %v3203_v29 = vpop.f32.mrb[29].mxu1 }
0x17f2   :  { %2796 = vst [vmem:[#allocation23] sm:$0x3] %v2793_v52 }
0x17f3   :  { %3681 = shalt.err (!%p3678_p10)
}
0x17f4   :  { %s3682_s13 = scalar_lea.hbm %s4430_s20, 32 }
0x17f5   :  { %p3683_p11 = scmp.ne.s32.totalorder %s4430_s20, %s3682_s13  ;;  %p3686_p12 = scmp.lt.u32.totalorder %s3682_s13, %s4430_s20 }
0x17f7   :  { %p3688_p13 = pnand %p3686_p12, %p3683_p11 }
0x17f9   :  { %3691 = shalt.err (!%p3688_p13)
}
0x17fa   :  { %2806 = dma.vmem_to_hbm [thread:$0]  %s2804_s28, 32, %s4430_s20, [#allocation4]  }
0x17fb   :  { %3706 = dma.done.wait [#allocation4], 32  }
0x17fc   :  { %3707 = vsyncadd [#allocation4], 4294967264 }
0x17fd   :  { %2810 = vsyncpa [#allocation3], 1 }
0x17fe   :  { %2811 = vsyncpa [#allocation6], 1 }
0x17ff   :  { %2812 = vsyncpa [#allocation9], 1 }
0x1800   :  { %2813 = vsyncpa [#allocation12], 1 }
0x1801   :  { %2814 = vsyncpa [#allocation15], 1 }
0x1802   :  { %2815 = vsyncpa [#allocation18], 1 }
0x1803   :  { %2816 = vsyncpa [#allocation21], 1 }
0x1804   :  { %2817 = vsyncpa [#allocation4], 1 }

</bundles_post_ra>
